<compile_context>
chip_gen: v7x
topology: tpu7x:2x2x1
jax: 0.10.0
libtpu: 0.0.40
codegen_flags: <defaults>
</compile_context>

<pallas_src>
import functools

import jax
import jax.numpy as jnp
from jax.experimental import pallas as pl
from jax.experimental.pallas import tpu as pltpu


def _round_up(n, m):
    return ((n + m - 1) // m) * m


# ----------------------------------------------------------------------------
# Pallas kernel 1: stride-1 "valid" conv, per-tap in-kernel accumulation,
# fused bias + ReLU.   x block: (TB, Hi, Wi, Cin), w: (kk*kk, Cin, Cout).
# ----------------------------------------------------------------------------
def _conv_s1_relu_kernel(x_ref, w_ref, b_ref, o_ref, *, kk):
    tb, _, _, cin = x_ref.shape
    _, ho, wo, cout = o_ref.shape
    m = tb * ho * wo
    acc = jnp.zeros((m, cout), jnp.float32)
    # kk*kk <= 9 taps: unrolled Python loop, one MXU dot per tap.  The input
    # tile was DMA'd to VMEM once by the pipeline; per-tap slices are VMEM
    # reads, not extra HBM traffic (this replaces the old im2col path).
    for t in range(kk * kk):
        kh, kw = divmod(t, kk)
        xs = x_ref[:, pl.ds(kh, ho), pl.ds(kw, wo), :]       # (tb, ho, wo, cin)
        xs = xs.reshape(m, cin)
        acc = acc + jnp.dot(xs, w_ref[t], preferred_element_type=jnp.float32)
    out = jnp.maximum(acc + b_ref[...], 0.0)                 # bias + ReLU in f32
    o_ref[...] = out.reshape(tb, ho, wo, cout).astype(o_ref.dtype)


def conv2d_s1_relu(x, w, b, *, tb_max=8):
    """Valid stride-1 conv + bias + ReLU.
    x: (B, Hi, Wi, Cin) bf16, w: (kk, kk, Cin, Cout) bf16, b: (Cout,) f32.
    The grid tiles the batch; each step is an M = TB*Ho*Wo row matmul stream."""
    x = x.astype(jnp.bfloat16)
    B, Hi, Wi, Cin = x.shape
    kk, _, _, Cout = w.shape
    Ho, Wo = Hi - kk + 1, Wi - kk + 1
    w2 = w.reshape(kk * kk, Cin, Cout).astype(jnp.bfloat16)
    b2 = b.reshape(1, Cout).astype(jnp.float32)

    if B <= tb_max:
        TB, Bp = B, B
    else:
        TB = tb_max
        Bp = _round_up(B, TB)
        x = jnp.pad(x, ((0, Bp - B), (0, 0), (0, 0), (0, 0)))

    out = pl.pallas_call(
        functools.partial(_conv_s1_relu_kernel, kk=kk),
        out_shape=jax.ShapeDtypeStruct((Bp, Ho, Wo, Cout), jnp.bfloat16),
        grid=(Bp // TB,),
        in_specs=[
            pl.BlockSpec((TB, Hi, Wi, Cin), lambda i: (i, 0, 0, 0)),
            pl.BlockSpec((kk * kk, Cin, Cout), lambda i: (0, 0, 0)),  # resident
            pl.BlockSpec((1, Cout), lambda i: (0, 0)),
        ],
        out_specs=pl.BlockSpec((TB, Ho, Wo, Cout), lambda i: (i, 0, 0, 0)),
        compiler_params=pltpu.CompilerParams(
            dimension_semantics=("parallel",)),
    )(x, w2, b2)
    return out[:B] if Bp != B else out


# ----------------------------------------------------------------------------
# Pallas kernel 2: fused 3-layer MLP head for the pair (single pallas_call).
# ----------------------------------------------------------------------------
def _mlp_head_kernel(x_ref, w1_ref, b1_ref, w2_ref, b2_ref, w3_ref, b3_ref,
                     o_ref):
    h = jnp.dot(x_ref[...], w1_ref[...], preferred_element_type=jnp.float32)
    h = jnp.maximum(h + b1_ref[...], 0.0).astype(jnp.bfloat16)
    h = jnp.dot(h, w2_ref[...], preferred_element_type=jnp.float32)
    h = jnp.maximum(h + b2_ref[...], 0.0).astype(jnp.bfloat16)
    q = jnp.dot(h, w3_ref[...], preferred_element_type=jnp.float32)
    o_ref[...] = (q + b3_ref[...]).astype(o_ref.dtype)


def mlp_head(x, w1, b1, w2, b2, w3, b3, *, tm_max=512):
    """x: (B, F) bf16; weights bf16 (F,H2),(H2,H2),(H2,A2); biases f32.
    Rows are tiled across the grid; all weights stay VMEM-resident."""
    x = x.astype(jnp.bfloat16)
    B, F = x.shape
    H2 = w1.shape[1]
    A2 = w3.shape[1]
    b1r = b1.reshape(1, H2).astype(jnp.float32)
    b2r = b2.reshape(1, H2).astype(jnp.float32)
    b3r = b3.reshape(1, A2).astype(jnp.float32)

    if B <= tm_max:
        TM, Bp = B, B
    else:
        TM = tm_max
        Bp = _round_up(B, TM)
        x = jnp.pad(x, ((0, Bp - B), (0, 0)))

    out = pl.pallas_call(
        _mlp_head_kernel,
        out_shape=jax.ShapeDtypeStruct((Bp, A2), jnp.float32),
        grid=(Bp // TM,),
        in_specs=[
            pl.BlockSpec((TM, F), lambda i: (i, 0)),
            pl.BlockSpec((F, H2), lambda i: (0, 0)),
            pl.BlockSpec((1, H2), lambda i: (0, 0)),
            pl.BlockSpec((H2, H2), lambda i: (0, 0)),
            pl.BlockSpec((1, H2), lambda i: (0, 0)),
            pl.BlockSpec((H2, A2), lambda i: (0, 0)),
            pl.BlockSpec((1, A2), lambda i: (0, 0)),
        ],
        out_specs=pl.BlockSpec((TM, A2), lambda i: (i, 0)),
        compiler_params=pltpu.CompilerParams(
            dimension_semantics=("parallel",)),
    )(x, w1, b1r, w2, b2r, w3, b3r)
    return out[:B] if Bp != B else out


# ----------------------------------------------------------------------------
# Strided conv  ->  stride-1 conv on a space-to-depth input (XLA glue, 1x data)
# ----------------------------------------------------------------------------
def _space_to_depth_for_conv(x, kk, s):
    """Rewrite a VALID conv (kernel kk, stride s, kk % s == 0) over x as a
    stride-1 conv (kernel kk//s) over the returned tensor."""
    B, H, W, C = x.shape
    oh, ow = (H - kk) // s + 1, (W - kk) // s + 1
    r = kk // s
    hb, wb = oh + r - 1, ow + r - 1            # block rows/cols the conv reads
    x = x[:, : hb * s, : wb * s, :]
    x = x.reshape(B, hb, s, wb, s, C)
    x = x.transpose(0, 1, 3, 2, 4, 5)
    return x.reshape(B, hb, wb, s * s * C)


def _s2d_weight(w, s):
    """(kk,kk,cin,cout) strided-conv weight -> (kk//s, kk//s, s*s*cin, cout)
    stride-1 weight matching _space_to_depth_for_conv's channel packing."""
    kk, _, cin, cout = w.shape
    r = kk // s
    w = w.reshape(r, s, r, s, cin, cout)
    w = w.transpose(0, 2, 1, 3, 4, 5)          # (dh, dw, ph, pw, cin, cout)
    return w.reshape(r, r, s * s * cin, cout)


# ----------------------------------------------------------------------------
# Pair fusion helpers (host-side, one-time relayouts)
# ----------------------------------------------------------------------------
def _block_diag(a, b):
    top = jnp.concatenate([a, jnp.zeros((a.shape[0], b.shape[1]), a.dtype)], 1)
    bot = jnp.concatenate([jnp.zeros((b.shape[0], a.shape[1]), a.dtype), b], 1)
    return jnp.concatenate([top, bot], 0)


def _conv_block_diag(a, b):
    kk = a.shape[0]
    cia, coa = a.shape[2], a.shape[3]
    cib, cob = b.shape[2], b.shape[3]
    out = jnp.zeros((kk, kk, cia + cib, coa + cob), a.dtype)
    out = out.at[:, :, :cia, :coa].set(a)
    out = out.at[:, :, cia:, coa:].set(b)
    return out


def _fuse_fc1(w1_q1, w1_q2, h3, w3):
    """Per-net fc1 weights are (64*h3*w3, hidden) with rows in PyTorch's NCHW
    flatten order (c, h, w).  Build the (h3*w3*128, 2*hidden) pair weight that
    consumes the kernels' NHWC channel-concatenated flatten directly, i.e. the
    runtime NCHW transpose is baked into the weight at init."""
    hh = jnp.arange(h3)[:, None, None]
    ww = jnp.arange(w3)[None, :, None]
    cc = jnp.arange(128)[None, None, :]
    c_local = jnp.where(cc < 64, cc, cc - 64)
    g = (c_local * (h3 * w3) + hh * w3 + ww).reshape(-1)        # per-net row id
    is_q1 = (jnp.broadcast_to(cc, (h3, w3, 128)).reshape(-1) < 64)[:, None]
    rows_q1 = jnp.take(w1_q1, g, axis=0)
    rows_q2 = jnp.take(w1_q2, g, axis=0)
    left = jnp.where(is_q1, rows_q1, 0.0)
    right = jnp.where(is_q1, 0.0, rows_q2)
    return jnp.concatenate([left, right], axis=1)


# ----------------------------------------------------------------------------
# Parameter construction (PyTorch-faithful init) + pair fusion
# ----------------------------------------------------------------------------
def init_params(key, input_shape, num_actions, hidden_dim):
    """Returns (fused_params, (raw_q1, raw_q2)).  Raw per-network weights keep
    the PyTorch layouts/initializers and are used only for the reference check;
    the fused params are what the kernels consume."""
    H, W, C = input_shape
    h1, w1 = (H - 8) // 4 + 1, (W - 8) // 4 + 1
    h2, w2 = (h1 - 4) // 2 + 1, (w1 - 4) // 2 + 1
    h3, w3 = (h2 - 3) // 1 + 1, (w2 - 3) // 1 + 1
    feat = 64 * h3 * w3

    keys = iter(jax.random.split(key, 24))

    def conv_w(kk, cin, cout):          # kaiming_uniform_(a=0): bound sqrt(6/fan_in)
        bound = (6.0 / (kk * kk * cin)) ** 0.5
        return jax.random.uniform(next(keys), (kk, kk, cin, cout),
                                  jnp.float32, -bound, bound)

    def lin_w(fin, fout):               # nn.Linear default: +-1/sqrt(fan_in)
        bound = 1.0 / (fin ** 0.5)
        return jax.random.uniform(next(keys), (fin, fout),
                                  jnp.float32, -bound, bound)

    def lin_b(fin, fout):
        bound = 1.0 / (fin ** 0.5)
        return jax.random.uniform(next(keys), (fout,),
                                  jnp.float32, -bound, bound)

    def one_net():
        return dict(
            c1=conv_w(8, C, 32), c1b=jnp.zeros((32,), jnp.float32),
            c2=conv_w(4, 32, 64), c2b=jnp.zeros((64,), jnp.float32),
            c3=conv_w(3, 64, 64), c3b=jnp.zeros((64,), jnp.float32),
            f1w=lin_w(feat, hidden_dim), f1b=lin_b(feat, hidden_dim),
            f2w=lin_w(hidden_dim, hidden_dim), f2b=lin_b(hidden_dim, hidden_dim),
            f3w=lin_w(hidden_dim, num_actions), f3b=lin_b(hidden_dim, num_actions),
        )

    q1, q2 = one_net(), one_net()

    # fuse the pair into one shared-LHS matmul stream
    c1 = jnp.concatenate([q1["c1"], q2["c1"]], axis=3)      # N concat (32+32)
    c2 = _conv_block_diag(q1["c2"], q2["c2"])               # (4,4,64,128)
    c3 = _conv_block_diag(q1["c3"], q2["c3"])               # (3,3,128,128)

    params = {
        # stride-4 / stride-2 convs re-expressed as 2x2 stride-1 convs on
        # space-to-depth inputs (weight relayout done once, here).
        "conv1_w": _s2d_weight(c1, 4).astype(jnp.bfloat16),   # (2,2,16C,64)
        "conv1_b": jnp.zeros((64,), jnp.float32),
        "conv2_w": _s2d_weight(c2, 2).astype(jnp.bfloat16),   # (2,2,256,128)
        "conv2_b": jnp.zeros((128,), jnp.float32),
        "conv3_w": c3.astype(jnp.bfloat16),                   # (3,3,128,128)
        "conv3_b": jnp.zeros((128,), jnp.float32),
        "fc1_w": _fuse_fc1(q1["f1w"], q2["f1w"], h3, w3).astype(jnp.bfloat16),
        "fc1_b": jnp.concatenate([q1["f1b"], q2["f1b"]]),
        "fc2_w": _block_diag(q1["f2w"], q2["f2w"]).astype(jnp.bfloat16),
        "fc2_b": jnp.concatenate([q1["f2b"], q2["f2b"]]),
        "fc3_w": _block_diag(q1["f3w"], q2["f3w"]).astype(jnp.bfloat16),
        "fc3_b": jnp.concatenate([q1["f3b"], q2["f3b"]]),
    }
    return params, (q1, q2)


# ----------------------------------------------------------------------------
# Forward pass: (B,H,W,C) NHWC states -> (q1, q2) as in VisualQNetworkPair
# ----------------------------------------------------------------------------
def visual_q_pair_forward(states, params):
    x = states.astype(jnp.bfloat16)
    x = _space_to_depth_for_conv(x, 8, 4)                       # conv1 (8x8, s4)
    x = conv2d_s1_relu(x, params["conv1_w"], params["conv1_b"])
    x = _space_to_depth_for_conv(x, 4, 2)                       # conv2 (4x4, s2)
    x = conv2d_s1_relu(x, params["conv2_w"], params["conv2_b"])
    x = conv2d_s1_relu(x, params["conv3_w"], params["conv3_b"])  # conv3 (3x3, s1)
    B = x.shape[0]
    feats = x.reshape(B, -1)     # NHWC flatten; NCHW perm is baked into fc1_w
    q = mlp_head(feats, params["fc1_w"], params["fc1_b"],
                 params["fc2_w"], params["fc2_b"],
                 params["fc3_w"], params["fc3_b"])               # (B, 2*A) f32
    a = q.shape[1] // 2
    return q[:, :a], q[:, a:]


# ----------------------------------------------------------------------------
# Pure-JAX f32 reference of the original (unfused) module, for checking
# ----------------------------------------------------------------------------
def _reference_forward_single(x, p):
    def conv(x, w, b, s):
        y = jax.lax.conv_general_dilated(
            x, w, window_strides=(s, s), padding="VALID",
            dimension_numbers=("NHWC", "HWIO", "NHWC"))
        return jnp.maximum(y + b, 0.0)

    x = conv(x, p["c1"], p["c1b"], 4)
    x = conv(x, p["c2"], p["c2b"], 2)
    x = conv(x, p["c3"], p["c3b"], 1)
    B = x.shape[0]
    x = x.transpose(0, 3, 1, 2).reshape(B, -1)      # PyTorch NCHW flatten
    x = jnp.maximum(x @ p["f1w"] + p["f1b"], 0.0)
    x = jnp.maximum(x @ p["f2w"] + p["f2b"], 0.0)
    return x @ p["f3w"] + p["f3b"]


# TODO(synk): BaseNetwork.save/load (torch checkpoint I/O) intentionally not
# translated -- out of scope for a compute kernel.


if __name__ == "__main__":
    batch = 2
    input_shape = (36, 36, 4)     # (H, W, C): 36 -> conv spatial dims 8, 3, 1
    num_actions = 6
    hidden_dim = 32

    key = jax.random.PRNGKey(0)
    k_param, k_x = jax.random.split(key)
    params, (raw_q1, raw_q2) = init_params(k_param, input_shape, num_actions,
                                           hidden_dim)
    x = jax.random.normal(k_x, (batch,) + input_shape, jnp.float32)

    fwd = jax.jit(visual_q_pair_forward)
    q1, q2 = fwd(x, params)
    jax.block_until_ready((q1, q2))

    assert q1.shape == (batch, num_actions), q1.shape
    assert q2.shape == (batch, num_actions), q2.shape
    assert q1.dtype == jnp.float32 and q2.dtype == jnp.float32

    # sanity check against the unfused f32 reference (bf16-level tolerance)
    r1 = _reference_forward_single(x, raw_q1)
    r2 = _reference_forward_single(x, raw_q2)
    assert bool(jnp.allclose(q1, r1, rtol=5e-2, atol=5e-2)), (
        float(jnp.max(jnp.abs(q1 - r1))))
    assert bool(jnp.allclose(q2, r2, rtol=5e-2, atol=5e-2)), (
        float(jnp.max(jnp.abs(q2 - r2))))

    print("KERNEL_OK")
</pallas_src>

<mosaic_0001>
module attributes {stable_mosaic.version = 11 : i64} {
  func.func @_conv_s1_relu_kernel(%arg0: i32, %arg1: memref<2x9x9x64xbf16, #tpu.memory_space<vmem>>, %arg2: memref<4x64x64xbf16, #tpu.memory_space<vmem>>, %arg3: memref<1x64xf32, #tpu.memory_space<vmem>>, %arg4: memref<2x8x8x64xbf16, #tpu.memory_space<vmem>>) attributes {dimension_semantics = [#tpu.dimension_semantics<parallel>], iteration_bounds = array<i64: 1>, scalar_prefetch = 0 : i64, scratch_operands = 0 : i64, tpu.core_type = #tpu.core_type<tc>, window_params = [{transform_indices = @transform_0, window_bounds = array<i64: 2, 9, 9, 64>}, {pipeline_mode = #tpu.pipeline_mode<synchronous>, transform_indices = @transform_1, window_bounds = array<i64: 4, 64, 64>}, {pipeline_mode = #tpu.pipeline_mode<synchronous>, transform_indices = @transform_2, window_bounds = array<i64: 1, 64>}, {transform_indices = @transform_3, window_bounds = array<i64: 2, 8, 8, 64>}]} {
    %cst = arith.constant 0.000000e+00 : f32
    %0 = vector.broadcast %cst : f32 to vector<128x64xf32>
    %c0 = arith.constant 0 : index
    %c0_0 = arith.constant 0 : index
    %c0_1 = arith.constant 0 : index
    %c0_2 = arith.constant 0 : index
    %1 = vector.load %arg1[%c0, %c0_0, %c0_1, %c0_2] : memref<2x9x9x64xbf16, #tpu.memory_space<vmem>>, vector<2x8x8x64xbf16>
    %2 = vector.shape_cast %1 : vector<2x8x8x64xbf16> to vector<128x64xbf16>
    %c0_3 = arith.constant 0 : index
    %c0_4 = arith.constant 0 : index
    %c0_5 = arith.constant 0 : index
    %3 = vector.load %arg2[%c0_3, %c0_4, %c0_5] : memref<4x64x64xbf16, #tpu.memory_space<vmem>>, vector<1x64x64xbf16>
    %4 = vector.shape_cast %3 : vector<1x64x64xbf16> to vector<64x64xbf16>
    %cst_6 = arith.constant dense<0.000000e+00> : vector<128x64xf32>
    %5 = tpu.matmul %2, %4, %cst_6 {dimension_numbers = #tpu.dot_dimension_numbers<[1], [0], [0], [1], [0, 0, 1, 1], [], []>} : vector<128x64xbf16>, vector<64x64xbf16>, vector<128x64xf32> -> vector<128x64xf32>
    %6 = arith.addf %0, %5 : vector<128x64xf32>
    %c0_7 = arith.constant 0 : index
    %c0_8 = arith.constant 0 : index
    %c1 = arith.constant 1 : index
    %c0_9 = arith.constant 0 : index
    %7 = vector.load %arg1[%c0_7, %c0_8, %c1, %c0_9] : memref<2x9x9x64xbf16, #tpu.memory_space<vmem>>, vector<2x8x8x64xbf16>
    %8 = vector.shape_cast %7 : vector<2x8x8x64xbf16> to vector<128x64xbf16>
    %c1_10 = arith.constant 1 : index
    %c0_11 = arith.constant 0 : index
    %c0_12 = arith.constant 0 : index
    %9 = vector.load %arg2[%c1_10, %c0_11, %c0_12] : memref<4x64x64xbf16, #tpu.memory_space<vmem>>, vector<1x64x64xbf16>
    %10 = vector.shape_cast %9 : vector<1x64x64xbf16> to vector<64x64xbf16>
    %cst_13 = arith.constant dense<0.000000e+00> : vector<128x64xf32>
    %11 = tpu.matmul %8, %10, %cst_13 {dimension_numbers = #tpu.dot_dimension_numbers<[1], [0], [0], [1], [0, 0, 1, 1], [], []>} : vector<128x64xbf16>, vector<64x64xbf16>, vector<128x64xf32> -> vector<128x64xf32>
    %12 = arith.addf %6, %11 : vector<128x64xf32>
    %c0_14 = arith.constant 0 : index
    %c1_15 = arith.constant 1 : index
    %c0_16 = arith.constant 0 : index
    %c0_17 = arith.constant 0 : index
    %13 = vector.load %arg1[%c0_14, %c1_15, %c0_16, %c0_17] : memref<2x9x9x64xbf16, #tpu.memory_space<vmem>>, vector<2x8x8x64xbf16>
    %14 = vector.shape_cast %13 : vector<2x8x8x64xbf16> to vector<128x64xbf16>
    %c2 = arith.constant 2 : index
    %c0_18 = arith.constant 0 : index
    %c0_19 = arith.constant 0 : index
    %15 = vector.load %arg2[%c2, %c0_18, %c0_19] : memref<4x64x64xbf16, #tpu.memory_space<vmem>>, vector<1x64x64xbf16>
    %16 = vector.shape_cast %15 : vector<1x64x64xbf16> to vector<64x64xbf16>
    %cst_20 = arith.constant dense<0.000000e+00> : vector<128x64xf32>
    %17 = tpu.matmul %14, %16, %cst_20 {dimension_numbers = #tpu.dot_dimension_numbers<[1], [0], [0], [1], [0, 0, 1, 1], [], []>} : vector<128x64xbf16>, vector<64x64xbf16>, vector<128x64xf32> -> vector<128x64xf32>
    %18 = arith.addf %12, %17 : vector<128x64xf32>
    %c0_21 = arith.constant 0 : index
    %c1_22 = arith.constant 1 : index
    %c1_23 = arith.constant 1 : index
    %c0_24 = arith.constant 0 : index
    %19 = vector.load %arg1[%c0_21, %c1_22, %c1_23, %c0_24] : memref<2x9x9x64xbf16, #tpu.memory_space<vmem>>, vector<2x8x8x64xbf16>
    %20 = vector.shape_cast %19 : vector<2x8x8x64xbf16> to vector<128x64xbf16>
    %c3 = arith.constant 3 : index
    %c0_25 = arith.constant 0 : index
    %c0_26 = arith.constant 0 : index
    %21 = vector.load %arg2[%c3, %c0_25, %c0_26] : memref<4x64x64xbf16, #tpu.memory_space<vmem>>, vector<1x64x64xbf16>
    %22 = vector.shape_cast %21 : vector<1x64x64xbf16> to vector<64x64xbf16>
    %cst_27 = arith.constant dense<0.000000e+00> : vector<128x64xf32>
    %23 = tpu.matmul %20, %22, %cst_27 {dimension_numbers = #tpu.dot_dimension_numbers<[1], [0], [0], [1], [0, 0, 1, 1], [], []>} : vector<128x64xbf16>, vector<64x64xbf16>, vector<128x64xf32> -> vector<128x64xf32>
    %24 = arith.addf %18, %23 : vector<128x64xf32>
    %c0_28 = arith.constant 0 : index
    %c0_29 = arith.constant 0 : index
    %25 = vector.load %arg3[%c0_28, %c0_29] : memref<1x64xf32, #tpu.memory_space<vmem>>, vector<1x64xf32>
    %26 = vector.broadcast %25 : vector<1x64xf32> to vector<128x64xf32>
    %27 = arith.addf %24, %26 : vector<128x64xf32>
    %cst_30 = arith.constant 0.000000e+00 : f32
    %28 = vector.broadcast %cst_30 : f32 to vector<128x64xf32>
    %29 = arith.maximumf %27, %28 : vector<128x64xf32>
    %30 = vector.shape_cast %29 : vector<128x64xf32> to vector<2x8x8x64xf32>
    %31 = arith.truncf %30 : vector<2x8x8x64xf32> to vector<2x8x8x64xbf16>
    %c0_31 = arith.constant 0 : index
    %c0_32 = arith.constant 0 : index
    %c0_33 = arith.constant 0 : index
    %c0_34 = arith.constant 0 : index
    %32 = vector.load %arg4[%c0_31, %c0_32, %c0_33, %c0_34] : memref<2x8x8x64xbf16, #tpu.memory_space<vmem>>, vector<2x8x8x64xbf16>
    tpu.vector_store %arg4[%c0_31, %c0_32, %c0_33, %c0_34], %31 {strides = array<i32>} : memref<2x8x8x64xbf16, #tpu.memory_space<vmem>>, vector<2x8x8x64xbf16>,
    return
  }
  func.func @transform_0(%arg0: i32) -> (i32, i32, i32, i32) {
    %c0_i32 = arith.constant 0 : i32
    %c0_i32_0 = arith.constant 0 : i32
    %c0_i32_1 = arith.constant 0 : i32
    %c0_i32_2 = arith.constant 0 : i32
    return %arg0, %c0_i32, %c0_i32_0, %c0_i32_1 : i32, i32, i32, i32
  }
  func.func @transform_1(%arg0: i32) -> (i32, i32, i32) {
    %c0_i32 = arith.constant 0 : i32
    %c0_i32_0 = arith.constant 0 : i32
    %c0_i32_1 = arith.constant 0 : i32
    %c0_i32_2 = arith.constant 0 : i32
    return %c0_i32, %c0_i32_0, %c0_i32_1 : i32, i32, i32
  }
  func.func @transform_2(%arg0: i32) -> (i32, i32) {
    %c0_i32 = arith.constant 0 : i32
    %c0_i32_0 = arith.constant 0 : i32
    %c0_i32_1 = arith.constant 0 : i32
    return %c0_i32, %c0_i32_0 : i32, i32
  }
  func.func @transform_3(%arg0: i32) -> (i32, i32, i32, i32) {
    %c0_i32 = arith.constant 0 : i32
    %c0_i32_0 = arith.constant 0 : i32
    %c0_i32_1 = arith.constant 0 : i32
    %c0_i32_2 = arith.constant 0 : i32
    return %arg0, %c0_i32, %c0_i32_0, %c0_i32_1 : i32, i32, i32, i32
  }
}

module attributes {stable_mosaic.version = 11 : i64} {
  func.func @_conv_s1_relu_kernel(%arg0: i32, %arg1: memref<2x4x4x256xbf16, #tpu.memory_space<vmem>>, %arg2: memref<4x256x128xbf16, #tpu.memory_space<vmem>>, %arg3: memref<1x128xf32, #tpu.memory_space<vmem>>, %arg4: memref<2x3x3x128xbf16, #tpu.memory_space<vmem>>) attributes {dimension_semantics = [#tpu.dimension_semantics<parallel>], iteration_bounds = array<i64: 1>, scalar_prefetch = 0 : i64, scratch_operands = 0 : i64, tpu.core_type = #tpu.core_type<tc>, window_params = [{transform_indices = @transform_0, window_bounds = array<i64: 2, 4, 4, 256>}, {pipeline_mode = #tpu.pipeline_mode<synchronous>, transform_indices = @transform_1, window_bounds = array<i64: 4, 256, 128>}, {pipeline_mode = #tpu.pipeline_mode<synchronous>, transform_indices = @transform_2, window_bounds = array<i64: 1, 128>}, {transform_indices = @transform_3, window_bounds = array<i64: 2, 3, 3, 128>}]} {
    %cst = arith.constant 0.000000e+00 : f32
    %0 = vector.broadcast %cst : f32 to vector<18x128xf32>
    %c0 = arith.constant 0 : index
    %c0_0 = arith.constant 0 : index
    %c0_1 = arith.constant 0 : index
    %c0_2 = arith.constant 0 : index
    %1 = vector.load %arg1[%c0, %c0_0, %c0_1, %c0_2] : memref<2x4x4x256xbf16, #tpu.memory_space<vmem>>, vector<2x3x3x256xbf16>
    %2 = vector.shape_cast %1 : vector<2x3x3x256xbf16> to vector<18x256xbf16>
    %c0_3 = arith.constant 0 : index
    %c0_4 = arith.constant 0 : index
    %c0_5 = arith.constant 0 : index
    %3 = vector.load %arg2[%c0_3, %c0_4, %c0_5] : memref<4x256x128xbf16, #tpu.memory_space<vmem>>, vector<1x256x128xbf16>
    %4 = vector.shape_cast %3 : vector<1x256x128xbf16> to vector<256x128xbf16>
    %cst_6 = arith.constant dense<0.000000e+00> : vector<18x128xf32>
    %5 = tpu.matmul %2, %4, %cst_6 {dimension_numbers = #tpu.dot_dimension_numbers<[1], [0], [0], [1], [0, 0, 1, 1], [], []>} : vector<18x256xbf16>, vector<256x128xbf16>, vector<18x128xf32> -> vector<18x128xf32>
    %6 = arith.addf %0, %5 : vector<18x128xf32>
    %c0_7 = arith.constant 0 : index
    %c0_8 = arith.constant 0 : index
    %c1 = arith.constant 1 : index
    %c0_9 = arith.constant 0 : index
    %7 = vector.load %arg1[%c0_7, %c0_8, %c1, %c0_9] : memref<2x4x4x256xbf16, #tpu.memory_space<vmem>>, vector<2x3x3x256xbf16>
    %8 = vector.shape_cast %7 : vector<2x3x3x256xbf16> to vector<18x256xbf16>
    %c1_10 = arith.constant 1 : index
    %c0_11 = arith.constant 0 : index
    %c0_12 = arith.constant 0 : index
    %9 = vector.load %arg2[%c1_10, %c0_11, %c0_12] : memref<4x256x128xbf16, #tpu.memory_space<vmem>>, vector<1x256x128xbf16>
    %10 = vector.shape_cast %9 : vector<1x256x128xbf16> to vector<256x128xbf16>
    %cst_13 = arith.constant dense<0.000000e+00> : vector<18x128xf32>
    %11 = tpu.matmul %8, %10, %cst_13 {dimension_numbers = #tpu.dot_dimension_numbers<[1], [0], [0], [1], [0, 0, 1, 1], [], []>} : vector<18x256xbf16>, vector<256x128xbf16>, vector<18x128xf32> -> vector<18x128xf32>
    %12 = arith.addf %6, %11 : vector<18x128xf32>
    %c0_14 = arith.constant 0 : index
    %c1_15 = arith.constant 1 : index
    %c0_16 = arith.constant 0 : index
    %c0_17 = arith.constant 0 : index
    %13 = vector.load %arg1[%c0_14, %c1_15, %c0_16, %c0_17] : memref<2x4x4x256xbf16, #tpu.memory_space<vmem>>, vector<2x3x3x256xbf16>
    %14 = vector.shape_cast %13 : vector<2x3x3x256xbf16> to vector<18x256xbf16>
    %c2 = arith.constant 2 : index
    %c0_18 = arith.constant 0 : index
    %c0_19 = arith.constant 0 : index
    %15 = vector.load %arg2[%c2, %c0_18, %c0_19] : memref<4x256x128xbf16, #tpu.memory_space<vmem>>, vector<1x256x128xbf16>
    %16 = vector.shape_cast %15 : vector<1x256x128xbf16> to vector<256x128xbf16>
    %cst_20 = arith.constant dense<0.000000e+00> : vector<18x128xf32>
    %17 = tpu.matmul %14, %16, %cst_20 {dimension_numbers = #tpu.dot_dimension_numbers<[1], [0], [0], [1], [0, 0, 1, 1], [], []>} : vector<18x256xbf16>, vector<256x128xbf16>, vector<18x128xf32> -> vector<18x128xf32>
    %18 = arith.addf %12, %17 : vector<18x128xf32>
    %c0_21 = arith.constant 0 : index
    %c1_22 = arith.constant 1 : index
    %c1_23 = arith.constant 1 : index
    %c0_24 = arith.constant 0 : index
    %19 = vector.load %arg1[%c0_21, %c1_22, %c1_23, %c0_24] : memref<2x4x4x256xbf16, #tpu.memory_space<vmem>>, vector<2x3x3x256xbf16>
    %20 = vector.shape_cast %19 : vector<2x3x3x256xbf16> to vector<18x256xbf16>
    %c3 = arith.constant 3 : index
    %c0_25 = arith.constant 0 : index
    %c0_26 = arith.constant 0 : index
    %21 = vector.load %arg2[%c3, %c0_25, %c0_26] : memref<4x256x128xbf16, #tpu.memory_space<vmem>>, vector<1x256x128xbf16>
    %22 = vector.shape_cast %21 : vector<1x256x128xbf16> to vector<256x128xbf16>
    %cst_27 = arith.constant dense<0.000000e+00> : vector<18x128xf32>
    %23 = tpu.matmul %20, %22, %cst_27 {dimension_numbers = #tpu.dot_dimension_numbers<[1], [0], [0], [1], [0, 0, 1, 1], [], []>} : vector<18x256xbf16>, vector<256x128xbf16>, vector<18x128xf32> -> vector<18x128xf32>
    %24 = arith.addf %18, %23 : vector<18x128xf32>
    %c0_28 = arith.constant 0 : index
    %c0_29 = arith.constant 0 : index
    %25 = vector.load %arg3[%c0_28, %c0_29] : memref<1x128xf32, #tpu.memory_space<vmem>>, vector<1x128xf32>
    %26 = vector.broadcast %25 : vector<1x128xf32> to vector<18x128xf32>
    %27 = arith.addf %24, %26 : vector<18x128xf32>
    %cst_30 = arith.constant 0.000000e+00 : f32
    %28 = vector.broadcast %cst_30 : f32 to vector<18x128xf32>
    %29 = arith.maximumf %27, %28 : vector<18x128xf32>
    %30 = vector.shape_cast %29 : vector<18x128xf32> to vector<2x3x3x128xf32>
    %31 = arith.truncf %30 : vector<2x3x3x128xf32> to vector<2x3x3x128xbf16>
    %c0_31 = arith.constant 0 : index
    %c0_32 = arith.constant 0 : index
    %c0_33 = arith.constant 0 : index
    %c0_34 = arith.constant 0 : index
    %32 = vector.load %arg4[%c0_31, %c0_32, %c0_33, %c0_34] : memref<2x3x3x128xbf16, #tpu.memory_space<vmem>>, vector<2x3x3x128xbf16>
    tpu.vector_store %arg4[%c0_31, %c0_32, %c0_33, %c0_34], %31 {strides = array<i32>} : memref<2x3x3x128xbf16, #tpu.memory_space<vmem>>, vector<2x3x3x128xbf16>,
    return
  }
  func.func @transform_0(%arg0: i32) -> (i32, i32, i32, i32) {
    %c0_i32 = arith.constant 0 : i32
    %c0_i32_0 = arith.constant 0 : i32
    %c0_i32_1 = arith.constant 0 : i32
    %c0_i32_2 = arith.constant 0 : i32
    return %arg0, %c0_i32, %c0_i32_0, %c0_i32_1 : i32, i32, i32, i32
  }
  func.func @transform_1(%arg0: i32) -> (i32, i32, i32) {
    %c0_i32 = arith.constant 0 : i32
    %c0_i32_0 = arith.constant 0 : i32
    %c0_i32_1 = arith.constant 0 : i32
    %c0_i32_2 = arith.constant 0 : i32
    return %c0_i32, %c0_i32_0, %c0_i32_1 : i32, i32, i32
  }
  func.func @transform_2(%arg0: i32) -> (i32, i32) {
    %c0_i32 = arith.constant 0 : i32
    %c0_i32_0 = arith.constant 0 : i32
    %c0_i32_1 = arith.constant 0 : i32
    return %c0_i32, %c0_i32_0 : i32, i32
  }
  func.func @transform_3(%arg0: i32) -> (i32, i32, i32, i32) {
    %c0_i32 = arith.constant 0 : i32
    %c0_i32_0 = arith.constant 0 : i32
    %c0_i32_1 = arith.constant 0 : i32
    %c0_i32_2 = arith.constant 0 : i32
    return %arg0, %c0_i32, %c0_i32_0, %c0_i32_1 : i32, i32, i32, i32
  }
}

module attributes {stable_mosaic.version = 11 : i64} {
  func.func @_conv_s1_relu_kernel(%arg0: i32, %arg1: memref<2x3x3x128xbf16, #tpu.memory_space<vmem>>, %arg2: memref<9x128x128xbf16, #tpu.memory_space<vmem>>, %arg3: memref<1x128xf32, #tpu.memory_space<vmem>>, %arg4: memref<2x1x1x128xbf16, #tpu.memory_space<vmem>>) attributes {dimension_semantics = [#tpu.dimension_semantics<parallel>], iteration_bounds = array<i64: 1>, scalar_prefetch = 0 : i64, scratch_operands = 0 : i64, tpu.core_type = #tpu.core_type<tc>, window_params = [{transform_indices = @transform_0, window_bounds = array<i64: 2, 3, 3, 128>}, {pipeline_mode = #tpu.pipeline_mode<synchronous>, transform_indices = @transform_1, window_bounds = array<i64: 9, 128, 128>}, {pipeline_mode = #tpu.pipeline_mode<synchronous>, transform_indices = @transform_2, window_bounds = array<i64: 1, 128>}, {transform_indices = @transform_3, window_bounds = array<i64: 2, 1, 1, 128>}]} {
    %cst = arith.constant 0.000000e+00 : f32
    %0 = vector.broadcast %cst : f32 to vector<2x128xf32>
    %c0 = arith.constant 0 : index
    %c0_0 = arith.constant 0 : index
    %c0_1 = arith.constant 0 : index
    %c0_2 = arith.constant 0 : index
    %1 = vector.load %arg1[%c0, %c0_0, %c0_1, %c0_2] : memref<2x3x3x128xbf16, #tpu.memory_space<vmem>>, vector<2x1x1x128xbf16>
    %2 = vector.shape_cast %1 : vector<2x1x1x128xbf16> to vector<2x128xbf16>
    %c0_3 = arith.constant 0 : index
    %c0_4 = arith.constant 0 : index
    %c0_5 = arith.constant 0 : index
    %3 = vector.load %arg2[%c0_3, %c0_4, %c0_5] : memref<9x128x128xbf16, #tpu.memory_space<vmem>>, vector<1x128x128xbf16>
    %4 = vector.shape_cast %3 : vector<1x128x128xbf16> to vector<128x128xbf16>
    %cst_6 = arith.constant dense<0.000000e+00> : vector<2x128xf32>
    %5 = tpu.matmul %2, %4, %cst_6 {dimension_numbers = #tpu.dot_dimension_numbers<[1], [0], [0], [1], [0, 0, 1, 1], [], []>} : vector<2x128xbf16>, vector<128x128xbf16>, vector<2x128xf32> -> vector<2x128xf32>
    %6 = arith.addf %0, %5 : vector<2x128xf32>
    %c0_7 = arith.constant 0 : index
    %c0_8 = arith.constant 0 : index
    %c1 = arith.constant 1 : index
    %c0_9 = arith.constant 0 : index
    %7 = vector.load %arg1[%c0_7, %c0_8, %c1, %c0_9] : memref<2x3x3x128xbf16, #tpu.memory_space<vmem>>, vector<2x1x1x128xbf16>
    %8 = vector.shape_cast %7 : vector<2x1x1x128xbf16> to vector<2x128xbf16>
    %c1_10 = arith.constant 1 : index
    %c0_11 = arith.constant 0 : index
    %c0_12 = arith.constant 0 : index
    %9 = vector.load %arg2[%c1_10, %c0_11, %c0_12] : memref<9x128x128xbf16, #tpu.memory_space<vmem>>, vector<1x128x128xbf16>
    %10 = vector.shape_cast %9 : vector<1x128x128xbf16> to vector<128x128xbf16>
    %cst_13 = arith.constant dense<0.000000e+00> : vector<2x128xf32>
    %11 = tpu.matmul %8, %10, %cst_13 {dimension_numbers = #tpu.dot_dimension_numbers<[1], [0], [0], [1], [0, 0, 1, 1], [], []>} : vector<2x128xbf16>, vector<128x128xbf16>, vector<2x128xf32> -> vector<2x128xf32>
    %12 = arith.addf %6, %11 : vector<2x128xf32>
    %c0_14 = arith.constant 0 : index
    %c0_15 = arith.constant 0 : index
    %c2 = arith.constant 2 : index
    %c0_16 = arith.constant 0 : index
    %13 = vector.load %arg1[%c0_14, %c0_15, %c2, %c0_16] : memref<2x3x3x128xbf16, #tpu.memory_space<vmem>>, vector<2x1x1x128xbf16>
    %14 = vector.shape_cast %13 : vector<2x1x1x128xbf16> to vector<2x128xbf16>
    %c2_17 = arith.constant 2 : index
    %c0_18 = arith.constant 0 : index
    %c0_19 = arith.constant 0 : index
    %15 = vector.load %arg2[%c2_17, %c0_18, %c0_19] : memref<9x128x128xbf16, #tpu.memory_space<vmem>>, vector<1x128x128xbf16>
    %16 = vector.shape_cast %15 : vector<1x128x128xbf16> to vector<128x128xbf16>
    %cst_20 = arith.constant dense<0.000000e+00> : vector<2x128xf32>
    %17 = tpu.matmul %14, %16, %cst_20 {dimension_numbers = #tpu.dot_dimension_numbers<[1], [0], [0], [1], [0, 0, 1, 1], [], []>} : vector<2x128xbf16>, vector<128x128xbf16>, vector<2x128xf32> -> vector<2x128xf32>
    %18 = arith.addf %12, %17 : vector<2x128xf32>
    %c0_21 = arith.constant 0 : index
    %c1_22 = arith.constant 1 : index
    %c0_23 = arith.constant 0 : index
    %c0_24 = arith.constant 0 : index
    %19 = vector.load %arg1[%c0_21, %c1_22, %c0_23, %c0_24] : memref<2x3x3x128xbf16, #tpu.memory_space<vmem>>, vector<2x1x1x128xbf16>
    %20 = vector.shape_cast %19 : vector<2x1x1x128xbf16> to vector<2x128xbf16>
    %c3 = arith.constant 3 : index
    %c0_25 = arith.constant 0 : index
    %c0_26 = arith.constant 0 : index
    %21 = vector.load %arg2[%c3, %c0_25, %c0_26] : memref<9x128x128xbf16, #tpu.memory_space<vmem>>, vector<1x128x128xbf16>
    %22 = vector.shape_cast %21 : vector<1x128x128xbf16> to vector<128x128xbf16>
    %cst_27 = arith.constant dense<0.000000e+00> : vector<2x128xf32>
    %23 = tpu.matmul %20, %22, %cst_27 {dimension_numbers = #tpu.dot_dimension_numbers<[1], [0], [0], [1], [0, 0, 1, 1], [], []>} : vector<2x128xbf16>, vector<128x128xbf16>, vector<2x128xf32> -> vector<2x128xf32>
    %24 = arith.addf %18, %23 : vector<2x128xf32>
    %c0_28 = arith.constant 0 : index
    %c1_29 = arith.constant 1 : index
    %c1_30 = arith.constant 1 : index
    %c0_31 = arith.constant 0 : index
    %25 = vector.load %arg1[%c0_28, %c1_29, %c1_30, %c0_31] : memref<2x3x3x128xbf16, #tpu.memory_space<vmem>>, vector<2x1x1x128xbf16>
    %26 = vector.shape_cast %25 : vector<2x1x1x128xbf16> to vector<2x128xbf16>
    %c4 = arith.constant 4 : index
    %c0_32 = arith.constant 0 : index
    %c0_33 = arith.constant 0 : index
    %27 = vector.load %arg2[%c4, %c0_32, %c0_33] : memref<9x128x128xbf16, #tpu.memory_space<vmem>>, vector<1x128x128xbf16>
    %28 = vector.shape_cast %27 : vector<1x128x128xbf16> to vector<128x128xbf16>
    %cst_34 = arith.constant dense<0.000000e+00> : vector<2x128xf32>
    %29 = tpu.matmul %26, %28, %cst_34 {dimension_numbers = #tpu.dot_dimension_numbers<[1], [0], [0], [1], [0, 0, 1, 1], [], []>} : vector<2x128xbf16>, vector<128x128xbf16>, vector<2x128xf32> -> vector<2x128xf32>
    %30 = arith.addf %24, %29 : vector<2x128xf32>
    %c0_35 = arith.constant 0 : index
    %c1_36 = arith.constant 1 : index
    %c2_37 = arith.constant 2 : index
    %c0_38 = arith.constant 0 : index
    %31 = vector.load %arg1[%c0_35, %c1_36, %c2_37, %c0_38] : memref<2x3x3x128xbf16, #tpu.memory_space<vmem>>, vector<2x1x1x128xbf16>
    %32 = vector.shape_cast %31 : vector<2x1x1x128xbf16> to vector<2x128xbf16>
    %c5 = arith.constant 5 : index
    %c0_39 = arith.constant 0 : index
    %c0_40 = arith.constant 0 : index
    %33 = vector.load %arg2[%c5, %c0_39, %c0_40] : memref<9x128x128xbf16, #tpu.memory_space<vmem>>, vector<1x128x128xbf16>
    %34 = vector.shape_cast %33 : vector<1x128x128xbf16> to vector<128x128xbf16>
    %cst_41 = arith.constant dense<0.000000e+00> : vector<2x128xf32>
    %35 = tpu.matmul %32, %34, %cst_41 {dimension_numbers = #tpu.dot_dimension_numbers<[1], [0], [0], [1], [0, 0, 1, 1], [], []>} : vector<2x128xbf16>, vector<128x128xbf16>, vector<2x128xf32> -> vector<2x128xf32>
    %36 = arith.addf %30, %35 : vector<2x128xf32>
    %c0_42 = arith.constant 0 : index
    %c2_43 = arith.constant 2 : index
    %c0_44 = arith.constant 0 : index
    %c0_45 = arith.constant 0 : index
    %37 = vector.load %arg1[%c0_42, %c2_43, %c0_44, %c0_45] : memref<2x3x3x128xbf16, #tpu.memory_space<vmem>>, vector<2x1x1x128xbf16>
    %38 = vector.shape_cast %37 : vector<2x1x1x128xbf16> to vector<2x128xbf16>
    %c6 = arith.constant 6 : index
    %c0_46 = arith.constant 0 : index
    %c0_47 = arith.constant 0 : index
    %39 = vector.load %arg2[%c6, %c0_46, %c0_47] : memref<9x128x128xbf16, #tpu.memory_space<vmem>>, vector<1x128x128xbf16>
    %40 = vector.shape_cast %39 : vector<1x128x128xbf16> to vector<128x128xbf16>
    %cst_48 = arith.constant dense<0.000000e+00> : vector<2x128xf32>
    %41 = tpu.matmul %38, %40, %cst_48 {dimension_numbers = #tpu.dot_dimension_numbers<[1], [0], [0], [1], [0, 0, 1, 1], [], []>} : vector<2x128xbf16>, vector<128x128xbf16>, vector<2x128xf32> -> vector<2x128xf32>
    %42 = arith.addf %36, %41 : vector<2x128xf32>
    %c0_49 = arith.constant 0 : index
    %c2_50 = arith.constant 2 : index
    %c1_51 = arith.constant 1 : index
    %c0_52 = arith.constant 0 : index
    %43 = vector.load %arg1[%c0_49, %c2_50, %c1_51, %c0_52] : memref<2x3x3x128xbf16, #tpu.memory_space<vmem>>, vector<2x1x1x128xbf16>
    %44 = vector.shape_cast %43 : vector<2x1x1x128xbf16> to vector<2x128xbf16>
    %c7 = arith.constant 7 : index
    %c0_53 = arith.constant 0 : index
    %c0_54 = arith.constant 0 : index
    %45 = vector.load %arg2[%c7, %c0_53, %c0_54] : memref<9x128x128xbf16, #tpu.memory_space<vmem>>, vector<1x128x128xbf16>
    %46 = vector.shape_cast %45 : vector<1x128x128xbf16> to vector<128x128xbf16>
    %cst_55 = arith.constant dense<0.000000e+00> : vector<2x128xf32>
    %47 = tpu.matmul %44, %46, %cst_55 {dimension_numbers = #tpu.dot_dimension_numbers<[1], [0], [0], [1], [0, 0, 1, 1], [], []>} : vector<2x128xbf16>, vector<128x128xbf16>, vector<2x128xf32> -> vector<2x128xf32>
    %48 = arith.addf %42, %47 : vector<2x128xf32>
    %c0_56 = arith.constant 0 : index
    %c2_57 = arith.constant 2 : index
    %c2_58 = arith.constant 2 : index
    %c0_59 = arith.constant 0 : index
    %49 = vector.load %arg1[%c0_56, %c2_57, %c2_58, %c0_59] : memref<2x3x3x128xbf16, #tpu.memory_space<vmem>>, vector<2x1x1x128xbf16>
    %50 = vector.shape_cast %49 : vector<2x1x1x128xbf16> to vector<2x128xbf16>
    %c8 = arith.constant 8 : index
    %c0_60 = arith.constant 0 : index
    %c0_61 = arith.constant 0 : index
    %51 = vector.load %arg2[%c8, %c0_60, %c0_61] : memref<9x128x128xbf16, #tpu.memory_space<vmem>>, vector<1x128x128xbf16>
    %52 = vector.shape_cast %51 : vector<1x128x128xbf16> to vector<128x128xbf16>
    %cst_62 = arith.constant dense<0.000000e+00> : vector<2x128xf32>
    %53 = tpu.matmul %50, %52, %cst_62 {dimension_numbers = #tpu.dot_dimension_numbers<[1], [0], [0], [1], [0, 0, 1, 1], [], []>} : vector<2x128xbf16>, vector<128x128xbf16>, vector<2x128xf32> -> vector<2x128xf32>
    %54 = arith.addf %48, %53 : vector<2x128xf32>
    %c0_63 = arith.constant 0 : index
    %c0_64 = arith.constant 0 : index
    %55 = vector.load %arg3[%c0_63, %c0_64] : memref<1x128xf32, #tpu.memory_space<vmem>>, vector<1x128xf32>
    %56 = vector.broadcast %55 : vector<1x128xf32> to vector<2x128xf32>
    %57 = arith.addf %54, %56 : vector<2x128xf32>
    %cst_65 = arith.constant 0.000000e+00 : f32
    %58 = vector.broadcast %cst_65 : f32 to vector<2x128xf32>
    %59 = arith.maximumf %57, %58 : vector<2x128xf32>
    %60 = vector.shape_cast %59 : vector<2x128xf32> to vector<2x1x1x128xf32>
    %61 = arith.truncf %60 : vector<2x1x1x128xf32> to vector<2x1x1x128xbf16>
    %c0_66 = arith.constant 0 : index
    %c0_67 = arith.constant 0 : index
    %c0_68 = arith.constant 0 : index
    %c0_69 = arith.constant 0 : index
    %62 = vector.load %arg4[%c0_66, %c0_67, %c0_68, %c0_69] : memref<2x1x1x128xbf16, #tpu.memory_space<vmem>>, vector<2x1x1x128xbf16>
    tpu.vector_store %arg4[%c0_66, %c0_67, %c0_68, %c0_69], %61 {strides = array<i32>} : memref<2x1x1x128xbf16, #tpu.memory_space<vmem>>, vector<2x1x1x128xbf16>,
    return
  }
  func.func @transform_0(%arg0: i32) -> (i32, i32, i32, i32) {
    %c0_i32 = arith.constant 0 : i32
    %c0_i32_0 = arith.constant 0 : i32
    %c0_i32_1 = arith.constant 0 : i32
    %c0_i32_2 = arith.constant 0 : i32
    return %arg0, %c0_i32, %c0_i32_0, %c0_i32_1 : i32, i32, i32, i32
  }
  func.func @transform_1(%arg0: i32) -> (i32, i32, i32) {
    %c0_i32 = arith.constant 0 : i32
    %c0_i32_0 = arith.constant 0 : i32
    %c0_i32_1 = arith.constant 0 : i32
    %c0_i32_2 = arith.constant 0 : i32
    return %c0_i32, %c0_i32_0, %c0_i32_1 : i32, i32, i32
  }
  func.func @transform_2(%arg0: i32) -> (i32, i32) {
    %c0_i32 = arith.constant 0 : i32
    %c0_i32_0 = arith.constant 0 : i32
    %c0_i32_1 = arith.constant 0 : i32
    return %c0_i32, %c0_i32_0 : i32, i32
  }
  func.func @transform_3(%arg0: i32) -> (i32, i32, i32, i32) {
    %c0_i32 = arith.constant 0 : i32
    %c0_i32_0 = arith.constant 0 : i32
    %c0_i32_1 = arith.constant 0 : i32
    %c0_i32_2 = arith.constant 0 : i32
    return %arg0, %c0_i32, %c0_i32_0, %c0_i32_1 : i32, i32, i32, i32
  }
}

module attributes {stable_mosaic.version = 11 : i64} {
  func.func @_mlp_head_kernel(%arg0: i32, %arg1: memref<2x128xbf16, #tpu.memory_space<vmem>>, %arg2: memref<128x64xbf16, #tpu.memory_space<vmem>>, %arg3: memref<1x64xf32, #tpu.memory_space<vmem>>, %arg4: memref<64x64xbf16, #tpu.memory_space<vmem>>, %arg5: memref<1x64xf32, #tpu.memory_space<vmem>>, %arg6: memref<64x12xbf16, #tpu.memory_space<vmem>>, %arg7: memref<1x12xf32, #tpu.memory_space<vmem>>, %arg8: memref<2x12xf32, #tpu.memory_space<vmem>>) attributes {dimension_semantics = [#tpu.dimension_semantics<parallel>], iteration_bounds = array<i64: 1>, scalar_prefetch = 0 : i64, scratch_operands = 0 : i64, tpu.core_type = #tpu.core_type<tc>, window_params = [{transform_indices = @transform_0, window_bounds = array<i64: 2, 128>}, {pipeline_mode = #tpu.pipeline_mode<synchronous>, transform_indices = @transform_1, window_bounds = array<i64: 128, 64>}, {pipeline_mode = #tpu.pipeline_mode<synchronous>, transform_indices = @transform_2, window_bounds = array<i64: 1, 64>}, {pipeline_mode = #tpu.pipeline_mode<synchronous>, transform_indices = @transform_3, window_bounds = array<i64: 64, 64>}, {pipeline_mode = #tpu.pipeline_mode<synchronous>, transform_indices = @transform_4, window_bounds = array<i64: 1, 64>}, {pipeline_mode = #tpu.pipeline_mode<synchronous>, transform_indices = @transform_5, window_bounds = array<i64: 64, 12>}, {pipeline_mode = #tpu.pipeline_mode<synchronous>, transform_indices = @transform_6, window_bounds = array<i64: 1, 12>}, {transform_indices = @transform_7, window_bounds = array<i64: 2, 12>}]} {
    %c0 = arith.constant 0 : index
    %c0_0 = arith.constant 0 : index
    %0 = vector.load %arg1[%c0, %c0_0] : memref<2x128xbf16, #tpu.memory_space<vmem>>, vector<2x128xbf16>
    %c0_1 = arith.constant 0 : index
    %c0_2 = arith.constant 0 : index
    %1 = vector.load %arg2[%c0_1, %c0_2] : memref<128x64xbf16, #tpu.memory_space<vmem>>, vector<128x64xbf16>
    %cst = arith.constant dense<0.000000e+00> : vector<2x64xf32>
    %2 = tpu.matmul %0, %1, %cst {dimension_numbers = #tpu.dot_dimension_numbers<[1], [0], [0], [1], [0, 0, 1, 1], [], []>} : vector<2x128xbf16>, vector<128x64xbf16>, vector<2x64xf32> -> vector<2x64xf32>
    %c0_3 = arith.constant 0 : index
    %c0_4 = arith.constant 0 : index
    %3 = vector.load %arg3[%c0_3, %c0_4] : memref<1x64xf32, #tpu.memory_space<vmem>>, vector<1x64xf32>
    %4 = vector.broadcast %3 : vector<1x64xf32> to vector<2x64xf32>
    %5 = arith.addf %2, %4 : vector<2x64xf32>
    %cst_5 = arith.constant 0.000000e+00 : f32
    %6 = vector.broadcast %cst_5 : f32 to vector<2x64xf32>
    %7 = arith.maximumf %5, %6 : vector<2x64xf32>
    %8 = arith.truncf %7 : vector<2x64xf32> to vector<2x64xbf16>
    %c0_6 = arith.constant 0 : index
    %c0_7 = arith.constant 0 : index
    %9 = vector.load %arg4[%c0_6, %c0_7] : memref<64x64xbf16, #tpu.memory_space<vmem>>, vector<64x64xbf16>
    %cst_8 = arith.constant dense<0.000000e+00> : vector<2x64xf32>
    %10 = tpu.matmul %8, %9, %cst_8 {dimension_numbers = #tpu.dot_dimension_numbers<[1], [0], [0], [1], [0, 0, 1, 1], [], []>} : vector<2x64xbf16>, vector<64x64xbf16>, vector<2x64xf32> -> vector<2x64xf32>
    %c0_9 = arith.constant 0 : index
    %c0_10 = arith.constant 0 : index
    %11 = vector.load %arg5[%c0_9, %c0_10] : memref<1x64xf32, #tpu.memory_space<vmem>>, vector<1x64xf32>
    %12 = vector.broadcast %11 : vector<1x64xf32> to vector<2x64xf32>
    %13 = arith.addf %10, %12 : vector<2x64xf32>
    %cst_11 = arith.constant 0.000000e+00 : f32
    %14 = vector.broadcast %cst_11 : f32 to vector<2x64xf32>
    %15 = arith.maximumf %13, %14 : vector<2x64xf32>
    %16 = arith.truncf %15 : vector<2x64xf32> to vector<2x64xbf16>
    %c0_12 = arith.constant 0 : index
    %c0_13 = arith.constant 0 : index
    %17 = vector.load %arg6[%c0_12, %c0_13] : memref<64x12xbf16, #tpu.memory_space<vmem>>, vector<64x12xbf16>
    %cst_14 = arith.constant dense<0.000000e+00> : vector<2x12xf32>
    %18 = tpu.matmul %16, %17, %cst_14 {dimension_numbers = #tpu.dot_dimension_numbers<[1], [0], [0], [1], [0, 0, 1, 1], [], []>} : vector<2x64xbf16>, vector<64x12xbf16>, vector<2x12xf32> -> vector<2x12xf32>
    %c0_15 = arith.constant 0 : index
    %c0_16 = arith.constant 0 : index
    %19 = vector.load %arg7[%c0_15, %c0_16] : memref<1x12xf32, #tpu.memory_space<vmem>>, vector<1x12xf32>
    %20 = vector.broadcast %19 : vector<1x12xf32> to vector<2x12xf32>
    %21 = arith.addf %18, %20 : vector<2x12xf32>
    %c0_17 = arith.constant 0 : index
    %c0_18 = arith.constant 0 : index
    %22 = vector.load %arg8[%c0_17, %c0_18] : memref<2x12xf32, #tpu.memory_space<vmem>>, vector<2x12xf32>
    tpu.vector_store %arg8[%c0_17, %c0_18], %21 {strides = array<i32>} : memref<2x12xf32, #tpu.memory_space<vmem>>, vector<2x12xf32>,
    return
  }
  func.func @transform_0(%arg0: i32) -> (i32, i32) {
    %c0_i32 = arith.constant 0 : i32
    %c0_i32_0 = arith.constant 0 : i32
    return %arg0, %c0_i32 : i32, i32
  }
  func.func @transform_1(%arg0: i32) -> (i32, i32) {
    %c0_i32 = arith.constant 0 : i32
    %c0_i32_0 = arith.constant 0 : i32
    %c0_i32_1 = arith.constant 0 : i32
    return %c0_i32, %c0_i32_0 : i32, i32
  }
  func.func @transform_2(%arg0: i32) -> (i32, i32) {
    %c0_i32 = arith.constant 0 : i32
    %c0_i32_0 = arith.constant 0 : i32
    %c0_i32_1 = arith.constant 0 : i32
    return %c0_i32, %c0_i32_0 : i32, i32
  }
  func.func @transform_3(%arg0: i32) -> (i32, i32) {
    %c0_i32 = arith.constant 0 : i32
    %c0_i32_0 = arith.constant 0 : i32
    %c0_i32_1 = arith.constant 0 : i32
    return %c0_i32, %c0_i32_0 : i32, i32
  }
  func.func @transform_4(%arg0: i32) -> (i32, i32) {
    %c0_i32 = arith.constant 0 : i32
    %c0_i32_0 = arith.constant 0 : i32
    %c0_i32_1 = arith.constant 0 : i32
    return %c0_i32, %c0_i32_0 : i32, i32
  }
  func.func @transform_5(%arg0: i32) -> (i32, i32) {
    %c0_i32 = arith.constant 0 : i32
    %c0_i32_0 = arith.constant 0 : i32
    %c0_i32_1 = arith.constant 0 : i32
    return %c0_i32, %c0_i32_0 : i32, i32
  }
  func.func @transform_6(%arg0: i32) -> (i32, i32) {
    %c0_i32 = arith.constant 0 : i32
    %c0_i32_0 = arith.constant 0 : i32
    %c0_i32_1 = arith.constant 0 : i32
    return %c0_i32, %c0_i32_0 : i32, i32
  }
  func.func @transform_7(%arg0: i32) -> (i32, i32) {
    %c0_i32 = arith.constant 0 : i32
    %c0_i32_0 = arith.constant 0 : i32
    return %arg0, %c0_i32 : i32, i32
  }
}

</mosaic_0001>

<bundles_post_ra>
// kernel: visual_q_pair_forward.4
= control target key start
LH: loop header
LB: loop body
LE: loop exit
PB: predicated region body
PF: predicated region fallthrough
CT: control target
= control target key end

     0   :  { %vm55_vm0 = vsmask.f32 3328  ;;  %vm56_vm1 = vsmask.f32 7440  ;;  %vm339_vm2 = vcmask 523264   ;;  %vm1378_vm4 = vcmask 519168   ;;  %s2348_s1 = inlined_call_operand.vmem [shape: bf16[4,64,64], index: 1, kind: input, shape index: {}]   ;;  %s2349_s0 = inlined_call_operand.vmem [shape: bf16[2,9,9,64], index: 0, kind: input, shape index: {}]   ;;  %s2350_s2 = inlined_call_operand.vmem [shape: f32[1,64], index: 2, kind: input, shape index: {}]   ;;  %s2351_s3 = inlined_call_operand.vmem [shape: bf16[2,8,8,64], index: 3, kind: output, shape index: {}]  }
   0x1   :  { %v1744_v0 = vld [vmem:[%s2348_s1 + $0x20] sm:$0xff]   ;;  %v1746_v2 = vld [vmem:[%s2348_s1 + $0x28] sm:$0xff]   ;;  %v1748_v4 = vld [vmem:[%s2348_s1 + $0x30] sm:$0xff]  }
   0x2   :  { %v1745_v1 = vld [vmem:[%s2348_s1 + $0x40] sm:$0xff]   ;;  %1600 = vmatprep.subr.bf16.mxu1 %v1744_v0  ;;  %v1747_v3 = vld [vmem:[%s2348_s1 + $0x48] sm:$0xff]   ;;  %v1749_v5 = vld [vmem:[%s2348_s1 + $0x50] sm:$0xff]  }
   0x3   :  { %1648 = vmatprep.subr.bf16.mxu0 %v1745_v1  ;;  %1601 = vmatpush3.bf16.msra.mxu1 %v1744_v0  ;;  %v1750_v6 = vld [vmem:[%s2348_s1 + $0x38] sm:$0xff]   ;;  %v1823_v8 = vld [vmem:[%s2349_s0] sm:$0xf]  ;;  %v1828_v9 = vld [vmem:[%s2349_s0 + $0x8] sm:$0xf] }
   0x4   :  { %1649 = vmatpush3.bf16.msra.mxu0 %v1745_v1  ;;  %1602 = vmatprep.subr.bf16.mxu1 %v1746_v2  ;;  %v1751_v7 = vld [vmem:[%s2348_s1 + $0x58] sm:$0xff]   ;;  %v39_v10 = vld [vmem:[%s2349_s0 + $0x4] sm:$0x1]  ;;  %v40_v11 = vld [vmem:[%s2349_s0 + $0xc] sm:$0x1]  ;;  %v59_v12 = vshrl.u32 %v1823_v8, 16 }
   0x5   :  { %1650 = vmatprep.subr.bf16.mxu0 %v1747_v3  ;;  %v62_v13 = vshll.u32 %v1823_v8, 16  ;;  %v68_v14 = vshll.u32 %v39_v10, 16  ;;  %v73_v15 = vshrl.u32 %v1828_v9, 16  ;;  %v76_v16 = vshll.u32 %v1828_v9, 16  ;;  %v1752_v22 = vld [vmem:[%s2349_s0 + $0x8] ss:$8 sps:$4 sm:$0xff]   ;;  %vm1864_vm3 = vmor %vm55_vm0, %vm56_vm1 }
   0x6   :  { %v82_v17 = vshll.u32 %v40_v11, 16  ;;  %v61_v18 = vrot.slane %v59_v12, 4  ;;  %v1846_v25 = vld [vmem:[%s2349_s0 + $0x10] sm:$0xf]  ;;  %v1851_v26 = vld [vmem:[%s2349_s0 + $0x18] sm:$0xf]  ;;  %1656 = vmatprep.mubr.msk.bf16.mxu0 %vm339_vm2, %v1752_v22 }
   0x7   :  { %1603 = vmatpush3.bf16.msra.mxu1 %v1746_v2  ;;  %v64_v19 = vrot.slane %v62_v13, 5  ;;  %v70_v20 = vrot.slane %v68_v14, 5  ;;  %v75_v21 = vrot.slane %v73_v15, 4  ;;  %v78_v23 = vrot.slane %v76_v16, 5  ;;  %v41_v28 = vld [vmem:[%s2349_s0 + $0x14] sm:$0x1] }
   0x8   :  { %1651 = vmatpush3.bf16.msra.mxu0 %v1747_v3  ;;  %1604 = vmatprep.subr.bf16.mxu1 %v1748_v4  ;;  %v84_v24 = vrot.slane %v82_v17, 5  ;;  %v42_v29 = vld [vmem:[%s2349_s0 + $0x1c] sm:$0x1]  ;;  %v87_v30 = vshrl.u32 %v1846_v25, 16  ;;  %v90_v31 = vshll.u32 %v1846_v25, 16  ;;  %v96_v34 = vshll.u32 %v41_v28, 16 }
   0x9   :  { %1652 = vmatprep.subr.bf16.mxu0 %v1749_v5  ;;  %v65_v27 = vor.u32 %v64_v19, %v61_v18  ;;  %v79_v33 = vor.u32 %v78_v23, %v75_v21  ;;  %v101_v35 = vshrl.u32 %v1851_v26, 16  ;;  %v104_v36 = vshll.u32 %v1851_v26, 16  ;;  %v1753_v37 = vld [vmem:[%s2348_s1] sm:$0xff]   ;;  %v1892_v56 = vld [vmem:[%s2349_s0 + $0x28] sm:$0xf] }
   0xa   :  { %v89_v39 = vrot.slane %v87_v30, 4  ;;  %v92_v40 = vrot.slane %v90_v31, 5  ;;  %v110_v41 = vshll.u32 %v42_v29, 16  ;;  %v98_v43 = vrot.slane %v96_v34, 5  ;;  %v1754_v49 = vld [vmem:[%s2349_s0 + $0x18] ss:$8 sps:$4 sm:$0xff]  }
   0xb   :  { %1605 = vmatpush3.bf16.msra.mxu1 %v1748_v4  ;;  %v66_v38 = vrot.slane %v65_v27, 4  ;;  %v80_v42 = vrot.slane %v79_v33, 4  ;;  %v103_v44 = vrot.slane %v101_v35, 4  ;;  %v106_v45 = vrot.slane %v104_v36, 5  ;;  %v1755_v50 = vld [vmem:[%s2348_s1 + $0x60] sm:$0xff]   ;;  %v1757_v4 = vld [vmem:[%s2348_s1 + $0x8] sm:$0xff]  }
   0xc   :  { %1653 = vmatpush3.bf16.msra.mxu0 %v1749_v5  ;;  %1606 = vmatprep.subr.bf16.mxu1 %v1750_v6  ;;  %v93_v47 = vor.u32 %v92_v40, %v89_v39  ;;  %v112_v48 = vrot.slane %v110_v41, 5  ;;  %v1886_v53 = vld [vmem:[%s2349_s0 + $0x20] sm:$0xf]  ;;  %v43_v57 = vld [vmem:[%s2349_s0 + $0x24] sm:$0x1]  ;;  %v129_v63 = vshrl.u32 %v1892_v56, 16 }
   0xd   :  { %1654 = vmatprep.subr.bf16.mxu0 %v1751_v7  ;;  %v71_v46 = vsel %vm1864_vm3, %v66_v38, %v70_v20  ;;  %v85_v51 = vsel %vm1864_vm3, %v80_v42, %v84_v24  ;;  %v107_v52 = vor.u32 %v106_v45, %v103_v44  ;;  %v115_v58 = vshrl.u32 %v1886_v53, 16  ;;  %v44_v60 = vld [vmem:[%s2349_s0 + $0x2c] sm:$0x1]  ;;  %v1756_v15 = vld [vmem:[%s2349_s0 + $0x28] ss:$8 sps:$4 sm:$0xff]  }
   0xe   :  { %v1407_v54 = vcombine.low %v71_v46, %v85_v51  ;;  %v94_v55 = vrot.slane %v93_v47, 4  ;;  %v118_v61 = vshll.u32 %v1886_v53, 16  ;;  %v124_v62 = vshll.u32 %v43_v57, 16  ;;  %v1759_v11 = vld [vmem:[%s2348_s1 + $0x68] sm:$0xff]   ;;  %v1921_v16 = vld [vmem:[%s2349_s0 + $0x30] sm:$0xf] }
   0xf   :  { %1607 = vmatpush3.bf16.msra.mxu1 %v1750_v6  ;;  %v108_v59 = vrot.slane %v107_v52, 4  ;;  %v117_v1 = vrot.slane %v115_v58, 4  ;;  %v132_v2 = vshll.u32 %v1892_v56, 16  ;;  %v138_v3 = vshll.u32 %v44_v60, 16  ;;  %v1926_v18 = vld [vmem:[%s2349_s0 + $0x38] sm:$0xf] }
  0x10   :  { %1655 = vmatpush3.bf16.msra.mxu0 %v1751_v7  ;;  %1624 = vmatprep.subr.bf16.mxu1 %v1753_v37  ;;  %v99_v0 = vsel %vm1864_vm3, %v94_v55, %v98_v43  ;;  %v120_v6 = vrot.slane %v118_v61, 5  ;;  %v126_v7 = vrot.slane %v124_v62, 5  ;;  %v131_v10 = vrot.slane %v129_v63, 4  ;;  %v45_v19 = vld [vmem:[%s2349_s0 + $0x34] sm:$0x1] }
  0x11   :  { %1672 = vmatprep.subr.bf16.mxu0 %v1755_v50  ;;  %1608 = vmatprep.mubr.msk.bf16.mxu1 %vm339_vm2, %v1407_v54  ;;  %v113_v5 = vsel %vm1864_vm3, %v108_v59, %v112_v48  ;;  %v134_v13 = vrot.slane %v132_v2, 5  ;;  %v140_v14 = vrot.slane %v138_v3, 5  ;;  %v46_v20 = vld [vmem:[%s2349_s0 + $0x3c] sm:$0x1]  ;;  %v143_v22 = vshrl.u32 %v1921_v16, 16  ;;  %v1761_v27 = vld [vmem:[%s2348_s1 + $0x10] sm:$0xff]  }
  0x12   :  { %v1408_v12 = vcombine.low %v99_v0, %v113_v5  ;;  %v121_v17 = vor.u32 %v120_v6, %v117_v1  ;;  %v146_v23 = vshll.u32 %v1921_v16, 16  ;;  %v152_v24 = vshll.u32 %v45_v19, 16  ;;  %v1758_v44 = vld [vmem:[%s2349_s0 + $0x38] ss:$8 sps:$4 sm:$0xff]   ;;  %v1956_v47 = vld [vmem:[%s2349_s0 + $0x48] sm:$0xf] }
  0x13   :  { %1657 = vmatmul.mubr.msk.bf16.vlgmr.msra.gmra.mrb[0].mxu0 %vm339_vm2, %v1754_v49  ;;  %v135_v21 = vor.u32 %v134_v13, %v131_v10  ;;  %v157_v29 = vshrl.u32 %v1926_v18, 16  ;;  %v160_v30 = vshll.u32 %v1926_v18, 16  ;;  %v166_v31 = vshll.u32 %v46_v20, 16  ;;  %v1961_v48 = vld [vmem:[%s2349_s0 + $0x50] sm:$0xf]  ;;  %v1765_v1 = vld [vmem:[%s2348_s1 + $0x18] sm:$0xff]  }
  0x14   :  { %1673 = vmatpush3.bf16.msra.mxu0 %v1755_v50  ;;  %1609 = vmatmul.mubr.msk.bf16.vlgmr.msra.gmra.mrb[0].mxu1 %vm339_vm2, %v1408_v12  ;;  %v122_v28 = vrot.slane %v121_v17, 4  ;;  %v145_v34 = vrot.slane %v143_v22, 4  ;;  %v148_v35 = vrot.slane %v146_v23, 5  ;;  %v154_v36 = vrot.slane %v152_v24, 5  ;;  %v47_v49 = vld [vmem:[%s2349_s0 + $0x4c] sm:$0x1] }
  0x15   :  { %1674 = vmatprep.subr.bf16.mxu0 %v1759_v11  ;;  %1660 = vmatprep.mubr.msk.bf16.mxu0 %vm339_vm2, %v1756_v15  ;;  %v136_v33 = vrot.slane %v135_v21, 4  ;;  %v159_v39 = vrot.slane %v157_v29, 4  ;;  %v162_v40 = vrot.slane %v160_v30, 5  ;;  %v168_v41 = vrot.slane %v166_v31, 5  ;;  %v48_v51 = vld [vmem:[%s2349_s0 + $0x54] sm:$0x1] }
  0x16   :  { %1625 = vmatpush3.bf16.msra.mxu1 %v1753_v37  ;;  %v127_v38 = vsel %vm1864_vm3, %v122_v28, %v126_v7  ;;  %v1763_v37 = vld [vmem:[%s2348_s1 + $0x70] sm:$0xff]   ;;  %v149_v43 = vor.u32 %v148_v35, %v145_v34  ;;  %v171_v52 = vshrl.u32 %v1956_v47, 16  ;;  %v174_v54 = vshll.u32 %v1956_v47, 16  ;;  %v1767_v7 = vld [vmem:[%s2348_s1 + $0x78] sm:$0xff]   ;;  %v1996_v13 = vld [vmem:[%s2349_s0 + $0x60] sm:$0xf] }
  0x17   :  { %1626 = vmatprep.subr.bf16.mxu1 %v1757_v4  ;;  %v141_v42 = vsel %vm1864_vm3, %v136_v33, %v140_v14  ;;  %v163_v46 = vor.u32 %v162_v40, %v159_v39  ;;  %v180_v55 = vshll.u32 %v47_v49, 16  ;;  %v185_v58 = vshrl.u32 %v1961_v48, 16  ;;  %v1760_v6 = vld [vmem:[%s2349_s0 + $0x50] ss:$8 sps:$4 sm:$0xff]   ;;  %v49_v14 = vld [vmem:[%s2349_s0 + $0x5c] sm:$0x1] }
  0x18   :  { %1675 = vmatpush3.bf16.msra.mxu0 %v1759_v11  ;;  %v1409_v45 = vcombine.low %v127_v38, %v141_v42  ;;  %v150_v50 = vrot.slane %v149_v43, 4  ;;  %v188_v59 = vshll.u32 %v1961_v48, 16  ;;  %v194_v60 = vshll.u32 %v48_v51, 16  ;;  %v1991_v12 = vld [vmem:[%s2349_s0 + $0x58] sm:$0xf] }
  0x19   :  { %1676 = vmatprep.subr.bf16.mxu0 %v1763_v37  ;;  %v164_v57 = vrot.slane %v163_v46, 4  ;;  %v173_v62 = vrot.slane %v171_v52, 4  ;;  %v176_v63 = vrot.slane %v174_v54, 5  ;;  %v182_v0 = vrot.slane %v180_v55, 5  ;;  %v50_v17 = vld [vmem:[%s2349_s0 + $0x64] sm:$0x1] }
  0x1a   :  { %1627 = vmatpush3.bf16.msra.mxu1 %v1757_v4  ;;  %1612 = vmatprep.mubr.msk.bf16.mxu1 %vm339_vm2, %v1409_v45  ;;  %v155_v61 = vsel %vm1864_vm3, %v150_v50, %v154_v36  ;;  %v187_v3 = vrot.slane %v185_v58, 4  ;;  %v190_v4 = vrot.slane %v188_v59, 5  ;;  %v196_v5 = vrot.slane %v194_v60, 5  ;;  %v1762_v40 = vld [vmem:[%s2349_s0 + $0x60] ss:$8 sps:$4 sm:$0xff]  }
  0x1b   :  { %1661 = vmatmul.mubr.msk.bf16.gmra.mrb[4].mxu0 %vm339_vm2, %v1758_v44  ;;  %1628 = vmatprep.subr.bf16.mxu1 %v1761_v27  ;;  %v169_v2 = vsel %vm1864_vm3, %v164_v57, %v168_v41  ;;  %v177_v11 = vor.u32 %v176_v63, %v173_v62  ;;  %v199_v19 = vshrl.u32 %v1991_v12, 16  ;;  %v202_v20 = vshll.u32 %v1991_v12, 16  ;;  %v2020_v42 = vld [vmem:[%s2349_s0 + $0x68] sm:$0xf]  ;;  %v2025_v43 = vld [vmem:[%s2349_s0 + $0x70] sm:$0xf] }
  0x1c   :  { %1677 = vmatpush3.bf16.msra.mxu0 %v1763_v37  ;;  %v1410_v10 = vcombine.low %v155_v61, %v169_v2  ;;  %v191_v15 = vor.u32 %v190_v4, %v187_v3  ;;  %1664 = vmatprep.mubr.msk.bf16.mxu0 %vm339_vm2, %v1760_v6  ;;  %v208_v21 = vshll.u32 %v49_v14, 16  ;;  %v213_v23 = vshrl.u32 %v1996_v13, 16  ;;  %v51_v45 = vld [vmem:[%s2349_s0 + $0x6c] sm:$0x1]  ;;  %v52_v46 = vld [vmem:[%s2349_s0 + $0x74] sm:$0x1] }
  0x1d   :  { %1678 = vmatprep.subr.bf16.mxu0 %v1767_v7  ;;  %v178_v22 = vrot.slane %v177_v11, 4  ;;  %v216_v24 = vshll.u32 %v1996_v13, 16  ;;  %v201_v29 = vrot.slane %v199_v19, 4  ;;  %v204_v30 = vrot.slane %v202_v20, 5  ;;  %v2049_v4 = vld [vmem:[%s2349_s0 + $0x78] sm:$0xf] }
  0x1e   :  { %1629 = vmatpush3.bf16.msra.mxu1 %v1761_v27  ;;  %v222_v27 = vshll.u32 %v50_v17, 16  ;;  %v192_v28 = vrot.slane %v191_v15, 4  ;;  %v210_v31 = vrot.slane %v208_v21, 5  ;;  %v215_v34 = vrot.slane %v213_v23, 4  ;;  %v54_v11 = vld [vmem:[%s2349_s0 + $0x84] sm:$0x1] }
  0x1f   :  { %1630 = vmatprep.subr.bf16.mxu1 %v1765_v1  ;;  %1613 = vmatmul.mubr.msk.bf16.gmra.mrb[4].mxu1 %vm339_vm2, %v1410_v10  ;;  %v183_v33 = vsel %vm1864_vm3, %v178_v22, %v182_v0  ;;  %v218_v35 = vrot.slane %v216_v24, 5  ;;  %v205_v39 = vor.u32 %v204_v30, %v201_v29  ;;  %v227_v49 = vshrl.u32 %v2020_v42, 16  ;;  %v1764_v0 = vld [vmem:[%s2349_s0 + $0x70] ss:$8 sps:$4 sm:$0xff]   ;;  %v53_v10 = vld [vmem:[%s2349_s0 + $0x7c] sm:$0x1] }
  0x20   :  { %1679 = vmatpush3.bf16.msra.mxu0 %v1767_v7  ;;  %v224_v36 = vrot.slane %v222_v27, 5  ;;  %v197_v38 = vsel %vm1864_vm3, %v192_v28, %v196_v5  ;;  %v230_v51 = vshll.u32 %v2020_v42, 16  ;;  %v236_v52 = vshll.u32 %v51_v45, 16  ;;  %v2054_v5 = vld [vmem:[%s2349_s0 + $0x80] sm:$0xf] }
  0x21   :  { %v1411_v41 = vcombine.low %v183_v33, %v197_v38  ;;  %v219_v37 = vor.u32 %v218_v35, %v215_v34  ;;  %v206_v44 = vrot.slane %v205_v39, 4  ;;  %v241_v54 = vshrl.u32 %v2025_v43, 16  ;;  %v1766_v39 = vld [vmem:[%s2349_s0 + $0x80] ss:$8 sps:$4 sm:$0xff]  }
  0x22   :  { %1631 = vmatpush3.bf16.msra.mxu1 %v1765_v1  ;;  %v229_v57 = vrot.slane %v227_v49, 4  ;;  %v244_v58 = vshll.u32 %v2025_v43, 16  ;;  %v250_v59 = vshll.u32 %v52_v46, 16  ;;  %v232_v61 = vrot.slane %v230_v51, 5  ;;  %v1493_v51 = vld [vmem:[%s2349_s0 + $0x10] sm:$0xf] }
  0x23   :  { %1665 = vmatmul.mubr.msk.bf16.gmra.mrb[8].mxu0 %vm339_vm2, %v1762_v40  ;;  %1616 = vmatprep.mubr.msk.bf16.mxu1 %vm339_vm2, %v1411_v41  ;;  %v220_v50 = vrot.slane %v219_v37, 4  ;;  %v211_v55 = vsel %vm1864_vm3, %v206_v44, %v210_v31  ;;  %v238_v62 = vrot.slane %v236_v52, 5  ;;  %v243_v63 = vrot.slane %v241_v54, 4  ;;  %v1491_v37 = vld [vmem:[%s2349_s0 + $0x8] sm:$0xf] }
  0x24   :  { %v246_v2 = vrot.slane %v244_v58, 5  ;;  %v252_v3 = vrot.slane %v250_v59, 5  ;;  %v1427_v6 = vcombine.low %v1823_v8, %v1828_v9  ;;  %v233_v7 = vor.u32 %v232_v61, %v229_v57  ;;  %1668 = vmatprep.mubr.msk.bf16.mxu0 %vm339_vm2, %v1764_v0  ;;  %v1494_v57 = vld [vmem:[%s2349_s0 + $0x14] sm:$0x1] }
  0x25   :  { %v225_v60 = vsel %vm1864_vm3, %v220_v50, %v224_v36  ;;  %v255_v14 = vshrl.u32 %v2049_v4, 16  ;;  %v258_v15 = vshll.u32 %v2049_v4, 16  ;;  %v1428_v17 = vcombine.low %v1846_v25, %v1851_v26  ;;  %v1492_v50 = vld [vmem:[%s2349_s0 + $0xc] sm:$0x1] }
  0x26   :  { %v1412_v1 = vcombine.low %v211_v55, %v225_v60  ;;  %v247_v19 = vor.u32 %v246_v2, %v243_v63  ;;  %v264_v20 = vshll.u32 %v53_v10, 16  ;;  %v269_v21 = vshrl.u32 %v2054_v5, 16 }
  0x27   :  { %v272_v22 = vshll.u32 %v2054_v5, 16  ;;  %v234_v23 = vrot.slane %v233_v7, 4  ;;  %v257_v24 = vrot.slane %v255_v14, 4  ;;  %v260_v27 = vrot.slane %v258_v15, 5 }
  0x28   :  { %1617 = vmatmul.mubr.msk.bf16.gmra.mrb[8].mxu1 %vm339_vm2, %v1412_v1  ;;  %v278_v28 = vshll.u32 %v54_v11, 16  ;;  %v248_v29 = vrot.slane %v247_v19, 4  ;;  %v271_v30 = vrot.slane %v269_v21, 4  ;;  %v1429_v33 = vcombine.low %v1886_v53, %v1892_v56  ;;  %v1495_v1 = vld [vmem:[%s2349_s0 + $0x18] sm:$0xf] }
  0x29   :  { %v274_v31 = vrot.slane %v272_v22, 5  ;;  %v239_v34 = vsel %vm1864_vm3, %v234_v23, %v238_v62  ;;  %v261_v35 = vor.u32 %v260_v27, %v257_v24  ;;  %v266_v36 = vrot.slane %v264_v20, 5  ;;  %v1496_v11 = vld [vmem:[%s2349_s0 + $0x1c] sm:$0x1]  ;;  %v1497_v20 = vld [vmem:[%s2349_s0 + $0x20] sm:$0xf] }
  0x2a   :  { %v280_v38 = vrot.slane %v278_v28, 5  ;;  %v253_v40 = vsel %vm1864_vm3, %v248_v29, %v252_v3  ;;  %v1430_v44 = vcombine.low %v1921_v16, %v1926_v18  ;;  %v1431_v45 = vcombine.low %v1956_v47, %v1961_v48  ;;  %v1498_v21 = vld [vmem:[%s2349_s0 + $0x24] sm:$0x1]  ;;  %v1499_v29 = vld [vmem:[%s2349_s0 + $0x28] sm:$0xf] }
  0x2b   :  { %v275_v41 = vor.u32 %v274_v31, %v271_v30  ;;  %v1413_v46 = vcombine.low %v239_v34, %v253_v40  ;;  %v262_v49 = vrot.slane %v261_v35, 4  ;;  %1669 = vmatmul.mubr.msk.bf16.gmra.mrb[12].mxu0 %vm339_vm2, %v1766_v39  ;;  %v906_v52 = vshrl.u32 %v1491_v37, 16  ;;  %v1509_v56 = vld [vmem:[%s2349_s0 + $0x58] sm:$0xf]  ;;  %v1514_v16 = vld [vmem:[%s2349_s0 + $0x6c] sm:$0x1] }
  0x2c   :  { %v1432_v54 = vcombine.low %v1991_v12, %v1996_v13  ;;  %v909_v58 = vshll.u32 %v1491_v37, 16  ;;  %v915_v59 = vshll.u32 %v1492_v50, 16  ;;  %v920_v60 = vshrl.u32 %v1493_v51, 16  ;;  %v1501_v37 = vld [vmem:[%s2349_s0 + $0x30] sm:$0xf] }
  0x2d   :  { %v276_v55 = vrot.slane %v275_v41, 4  ;;  %1620 = vmatprep.mubr.msk.bf16.mxu1 %vm339_vm2, %v1413_v46  ;;  %v267_v61 = vsel %vm1864_vm3, %v262_v49, %v266_v36  ;;  %v908_v62 = vrot.slane %v906_v52, 4  ;;  %v923_v63 = vshll.u32 %v1493_v51, 16  ;;  %v1500_v36 = vld [vmem:[%s2349_s0 + $0x2c] sm:$0x1] }
  0x2e   :  { %v929_v0 = vshll.u32 %v1494_v57, 16  ;;  %v911_v3 = vrot.slane %v909_v58, 5  ;;  %v917_v7 = vrot.slane %v915_v59, 5  ;;  %v922_v10 = vrot.slane %v920_v60, 4  ;;  %v1502_v58 = vld [vmem:[%s2349_s0 + $0x34] sm:$0x1] }
  0x2f   :  { %v281_v2 = vsel %vm1864_vm3, %v276_v55, %v280_v38  ;;  %v925_v15 = vrot.slane %v923_v63, 5  ;;  %v1433_v22 = vcombine.low %v2020_v42, %v2025_v43  ;;  %v934_v24 = vshrl.u32 %v1495_v1, 16  ;;  %v1520_v12 = vld [vmem:[%s2349_s0 + $0x84] sm:$0x1] }
  0x30   :  { %v1414_v14 = vcombine.low %v267_v61, %v281_v2  ;;  %v931_v19 = vrot.slane %v929_v0, 5  ;;  %v912_v23 = vor.u32 %v911_v3, %v908_v62  ;;  %v937_v27 = vshll.u32 %v1495_v1, 16  ;;  %v1503_v61 = vld [vmem:[%s2349_s0 + $0x38] sm:$0xf]  ;;  %v1504_v2 = vld [vmem:[%s2349_s0 + $0x3c] sm:$0x1] }
  0x31   :  { %v943_v28 = vshll.u32 %v1496_v11, 16  ;;  %v926_v30 = vor.u32 %v925_v15, %v922_v10  ;;  %v948_v31 = vshrl.u32 %v1497_v20, 16  ;;  %v951_v34 = vshll.u32 %v1497_v20, 16  ;;  %v1505_v20 = vld [vmem:[%s2349_s0 + $0x40] sm:$0xf] }
  0x32   :  { %1621 = vmatmul.mubr.msk.bf16.gmra.mrb[12].mxu1 %vm339_vm2, %v1414_v14  ;;  %v957_v35 = vshll.u32 %v1498_v21, 16  ;;  %v913_v38 = vrot.slane %v912_v23, 4  ;;  %v936_v39 = vrot.slane %v934_v24, 4  ;;  %v939_v40 = vrot.slane %v937_v27, 5  ;;  %v1506_v21 = vld [vmem:[%s2349_s0 + $0x44] sm:$0x1] }
  0x33   :  { %1632 = vmatprep.mubr.msk.bf16.mxu1 %vm339_vm2, %v1427_v6  ;;  %v945_v41 = vrot.slane %v943_v28, 5  ;;  %v927_v46 = vrot.slane %v926_v30, 4  ;;  %v950_v49 = vrot.slane %v948_v31, 4  ;;  %v953_v50 = vrot.slane %v951_v34, 5  ;;  %v1507_v30 = vld [vmem:[%s2349_s0 + $0x50] sm:$0xf] }
  0x34   :  { %v959_v51 = vrot.slane %v957_v35, 5  ;;  %v918_v52 = vsel %vm1864_vm3, %v913_v38, %v917_v7  ;;  %v940_v55 = vor.u32 %v939_v40, %v936_v39  ;;  %v962_v57 = vshrl.u32 %v1499_v29, 16  ;;  %v1508_v39 = vld [vmem:[%s2349_s0 + $0x54] sm:$0x1] }
  0x35   :  { %v965_v8 = vshll.u32 %v1499_v29, 16  ;;  %v932_v9 = vsel %vm1864_vm3, %v927_v46, %v931_v19  ;;  %v954_v6 = vor.u32 %v953_v50, %v950_v49  ;;  %v971_v59 = vshll.u32 %v1500_v36, 16 }
  0x36   :  { %v976_v60 = vshrl.u32 %v1501_v37, 16  ;;  %v1531_v62 = vcombine.low %v918_v52, %v932_v9  ;;  %v941_v63 = vrot.slane %v940_v55, 4  ;;  %v964_v0 = vrot.slane %v962_v57, 4  ;;  %v1510_v55 = vld [vmem:[%s2349_s0 + $0x5c] sm:$0x1] }
  0x37   :  { %v967_v1 = vrot.slane %v965_v8, 5  ;;  %v955_v3 = vrot.slane %v954_v6, 4  ;;  %v973_v7 = vrot.slane %v971_v59, 5  ;;  %v979_v11 = vshll.u32 %v1501_v37, 16 }
  0x38   :  { %v978_v10 = vrot.slane %v976_v60, 4  ;;  %1680 = vmatprep.mubr.msk.bf16.mxu0 %vm339_vm2, %v1531_v62  ;;  %v946_v14 = vsel %vm1864_vm3, %v941_v63, %v945_v41  ;;  %v985_v19 = vshll.u32 %v1502_v58, 16  ;;  %v990_v23 = vshrl.u32 %v1503_v61, 16  ;;  %v1511_v60 = vld [vmem:[%s2349_s0 + $0x60] sm:$0xf] }
  0x39   :  { %v968_v15 = vor.u32 %v967_v1, %v964_v0  ;;  %v960_v24 = vsel %vm1864_vm3, %v955_v3, %v959_v51  ;;  %v981_v27 = vrot.slane %v979_v11, 5  ;;  %v993_v28 = vshll.u32 %v1503_v61, 16  ;;  %v1512_v1 = vld [vmem:[%s2349_s0 + $0x64] sm:$0x1] }
  0x3a   :  { %1633 = vmatmul.mubr.msk.bf16.vlgmr.msra.gmra.mrb[0].mxu1 %vm339_vm2, %v1428_v17  ;;  %v999_v29 = vshll.u32 %v1504_v2, 16  ;;  %v1532_v31 = vcombine.low %v946_v14, %v960_v24  ;;  %v987_v25 = vrot.slane %v985_v19, 5  ;;  %v992_v26 = vrot.slane %v990_v23, 4  ;;  %v1513_v2 = vld [vmem:[%s2349_s0 + $0x68] sm:$0xf] }
  0x3b   :  { %1636 = vmatprep.mubr.msk.bf16.mxu1 %vm339_vm2, %v1429_v33  ;;  %v969_v34 = vrot.slane %v968_v15, 4  ;;  %v982_v17 = vor.u32 %v981_v27, %v978_v10  ;;  %v995_v35 = vrot.slane %v993_v28, 5  ;;  %v1004_v38 = vshrl.u32 %v1505_v20, 16  ;;  %v1515_v24 = vld [vmem:[%s2349_s0 + $0x70] sm:$0xf] }
  0x3c   :  { %v1001_v36 = vrot.slane %v999_v29, 5  ;;  %1681 = vmatmul.mubr.msk.bf16.vlgmr.msra.gmra.mrb[0].mxu0 %vm339_vm2, %v1532_v31  ;;  %v1007_v41 = vshll.u32 %v1505_v20, 16  ;;  %v1013_v53 = vshll.u32 %v1506_v21, 16  ;;  %v1018_v33 = vshrl.u32 %v1507_v30, 16  ;;  %v1516_v28 = vld [vmem:[%s2349_s0 + $0x74] sm:$0x1] }
  0x3d   :  { %v974_v40 = vsel %vm1864_vm3, %v969_v34, %v973_v7  ;;  %v983_v37 = vrot.slane %v982_v17, 4  ;;  %v996_v46 = vor.u32 %v995_v35, %v992_v26  ;;  %v1006_v49 = vrot.slane %v1004_v38, 4  ;;  %v1517_v29 = vld [vmem:[%s2349_s0 + $0x78] sm:$0xf]  ;;  %v1518_v38 = vld [vmem:[%s2349_s0 + $0x7c] sm:$0x1] }
  0x3e   :  { %v1021_v50 = vshll.u32 %v1507_v30, 16  ;;  %v1009_v51 = vrot.slane %v1007_v41, 5  ;;  %v1015_v52 = vrot.slane %v1013_v53, 5  ;;  %v1020_v57 = vrot.slane %v1018_v33, 4 }
  0x3f   :  { %v1027_v8 = vshll.u32 %v1508_v39, 16  ;;  %v988_v9 = vsel %vm1864_vm3, %v983_v37, %v987_v25  ;;  %v997_v6 = vrot.slane %v996_v46, 4  ;;  %v1032_v59 = vshrl.u32 %v1509_v56, 16 }
  0x40   :  { %v1023_v58 = vrot.slane %v1021_v50, 5  ;;  %v1533_v61 = vcombine.low %v974_v40, %v988_v9  ;;  %v1010_v62 = vor.u32 %v1009_v51, %v1006_v49  ;;  %v1035_v0 = vshll.u32 %v1509_v56, 16 }
  0x41   :  { %v1029_v63 = vrot.slane %v1027_v8, 5  ;;  %v1002_v3 = vsel %vm1864_vm3, %v997_v6, %v1001_v36  ;;  %v1034_v10 = vrot.slane %v1032_v59, 4  ;;  %v1041_v11 = vshll.u32 %v1510_v55, 16 }
  0x42   :  { %1637 = vmatmul.mubr.msk.bf16.gmra.mrb[4].mxu1 %vm339_vm2, %v1430_v44  ;;  %v1024_v7 = vor.u32 %v1023_v58, %v1020_v57  ;;  %1684 = vmatprep.mubr.msk.bf16.mxu0 %vm339_vm2, %v1533_v61  ;;  %v1011_v14 = vrot.slane %v1010_v62, 4  ;;  %v1037_v15 = vrot.slane %v1035_v0, 5  ;;  %v1046_v18 = vshrl.u32 %v1511_v60, 16  ;;  %v1522_v61 = vld [vmem:[%s2349_s0 + $0x8c] sm:$0x1] }
  0x43   :  { %1640 = vmatprep.mubr.msk.bf16.mxu1 %vm339_vm2, %v1431_v45  ;;  %v1049_v44 = vshll.u32 %v1511_v60, 16  ;;  %v1043_v20 = vrot.slane %v1041_v11, 5  ;;  %v1055_v21 = vshll.u32 %v1512_v1, 16  ;;  %v1060_v23 = vshrl.u32 %v1513_v2, 16 }
  0x44   :  { %v1025_v19 = vrot.slane %v1024_v7, 4  ;;  %v1016_v47 = vsel %vm1864_vm3, %v1011_v14, %v1015_v52  ;;  %v1038_v48 = vor.u32 %v1037_v15, %v1034_v10  ;;  %v1048_v45 = vrot.slane %v1046_v18, 4  ;;  %v1521_v52 = vld [vmem:[%s2349_s0 + $0x88] sm:$0xf] }
  0x45   :  { %v1051_v27 = vrot.slane %v1049_v44, 5  ;;  %v1534_v30 = vcombine.low %v1002_v3, %v1016_v47  ;;  %v1062_v34 = vrot.slane %v1060_v23, 4  ;;  %v1434_v25 = vcombine.low %v2049_v4, %v2054_v5  ;;  %v1519_v5 = vld [vmem:[%s2349_s0 + $0x80] sm:$0xf] }
  0x46   :  { %v1030_v31 = vsel %vm1864_vm3, %v1025_v19, %v1029_v63  ;;  %v1039_v26 = vrot.slane %v1038_v48, 4  ;;  %v1063_v35 = vshll.u32 %v1513_v2, 16  ;;  %v1069_v36 = vshll.u32 %v1514_v16, 16 }
  0x47   :  { %v1052_v17 = vor.u32 %v1051_v27, %v1048_v45  ;;  %1685 = vmatmul.mubr.msk.bf16.gmra.mrb[4].mxu0 %vm339_vm2, %v1534_v30  ;;  %v1074_v39 = vshrl.u32 %v1515_v24, 16  ;;  %v1077_v40 = vshll.u32 %v1515_v24, 16  ;;  %v1083_v41 = vshll.u32 %v1516_v28, 16 }
  0x48   :  { %v1088_v53 = vshrl.u32 %v1517_v29, 16  ;;  %v1044_v56 = vsel %vm1864_vm3, %v1039_v26, %v1043_v20  ;;  %v1057_v37 = vrot.slane %v1055_v21, 5  ;;  %v1065_v4 = vrot.slane %v1063_v35, 5 }
  0x49   :  { %v1053_v33 = vrot.slane %v1052_v17, 4  ;;  %v1535_v46 = vcombine.low %v1030_v31, %v1044_v56  ;;  %v1071_v49 = vrot.slane %v1069_v36, 5  ;;  %v1076_v50 = vrot.slane %v1074_v39, 4 }
  0x4a   :  { %1641 = vmatmul.mubr.msk.bf16.gmra.mrb[8].mxu1 %vm339_vm2, %v1432_v54  ;;  %v1079_v51 = vrot.slane %v1077_v40, 5  ;;  %v1066_v55 = vor.u32 %v1065_v4, %v1062_v34  ;;  %v1085_v57 = vrot.slane %v1083_v41, 5  ;;  %v1090_v8 = vrot.slane %v1088_v53, 4 }
  0x4b   :  { %1644 = vmatprep.mubr.msk.bf16.mxu1 %vm339_vm2, %v1433_v22  ;;  %v1091_v9 = vshll.u32 %v1517_v29, 16  ;;  %1688 = vmatprep.mubr.msk.bf16.mxu0 %vm339_vm2, %v1535_v46  ;;  %v1097_v54 = vshll.u32 %v1518_v38, 16  ;;  %v1102_v6 = vshrl.u32 %v1519_v5, 16  ;;  %v1105_v58 = vshll.u32 %v1519_v5, 16 }
  0x4c   :  { %v1080_v13 = vor.u32 %v1079_v51, %v1076_v50  ;;  %v1058_v59 = vsel %vm1864_vm3, %v1053_v33, %v1057_v37  ;;  %v1067_v60 = vrot.slane %v1066_v55, 4  ;;  %v1116_v43 = vshrl.u32 %v1521_v52, 16 }
  0x4d   :  { %v1093_v42 = vrot.slane %v1091_v9, 5  ;;  %v1104_v62 = vrot.slane %v1102_v6, 4  ;;  %v1107_v63 = vrot.slane %v1105_v58, 5  ;;  %v1111_v0 = vshll.u32 %v1520_v12, 16 }
  0x4e   :  { %v1081_v22 = vrot.slane %v1080_v13, 4  ;;  %v1072_v1 = vsel %vm1864_vm3, %v1067_v60, %v1071_v49  ;;  %v1099_v3 = vrot.slane %v1097_v54, 5  ;;  %v1118_v11 = vrot.slane %v1116_v43, 4 }
  0x4f   :  { %v1094_v2 = vor.u32 %v1093_v42, %v1090_v8  ;;  %v1536_v7 = vcombine.low %v1058_v59, %v1072_v1  ;;  %v1108_v10 = vor.u32 %v1107_v63, %v1104_v62  ;;  %v1119_v14 = vshll.u32 %v1521_v52, 16 }
  0x50   :  { %v1086_v15 = vsel %vm1864_vm3, %v1081_v22, %v1085_v57  ;;  %v1125_v18 = vshll.u32 %v1522_v61, 16  ;;  %v1113_v19 = vrot.slane %v1111_v0, 5 }
  0x51   :  { %v1095_v16 = vrot.slane %v1094_v2, 4  ;;  %1689 = vmatmul.mubr.msk.bf16.gmra.mrb[8].mxu0 %vm339_vm2, %v1536_v7  ;;  %v1109_v44 = vrot.slane %v1108_v10, 4  ;;  %v1121_v20 = vrot.slane %v1119_v14, 5 }
  0x52   :  { %1645 = vmatmul.mubr.msk.bf16.gmra.mrb[12].mxu1 %vm339_vm2, %v1434_v25  ;;  %v1127_v47 = vrot.slane %v1125_v18, 5  ;;  %v2266_v25 = vld [vmem:[%s2350_s2] ss:$0 sm:$0xff] }
  0x53   :  { %v1100_v21 = vsel %vm1864_vm3, %v1095_v16, %v1099_v3  ;;  %v1122_v24 = vor.u32 %v1121_v20, %v1118_v11  ;;  %v1114_v48 = vsel %vm1864_vm3, %v1109_v44, %v1113_v19 }
  0x54   :  { %v1537_v23 = vcombine.low %v1086_v15, %v1100_v21 }
  0x55   :  { %v1123_v45 = vrot.slane %v1122_v24, 4 }
  0x56   :  { %1692 = vmatprep.mubr.msk.bf16.mxu0 %vm339_vm2, %v1537_v23 }
  0x57   :  { %v1128_v27 = vsel %vm1864_vm3, %v1123_v45, %v1127_v47 }
  0x58   :  { %v1538_v28 = vcombine.low %v1114_v48, %v1128_v27 }
  0x5a   :  { %1693 = vmatmul.mubr.msk.bf16.gmra.mrb[12].mxu0 %vm339_vm2, %v1538_v28 }
 0x10d   :  { %v1634_v29 = vpop.f32.mrb[0].mxu1 }
 0x10e   :  { %v583_v30 = vpop.f32.mrb[1].mxu1 }
 0x10f   :  { %v1635_v31 = vpop.f32.mrb[2].mxu1  ;;  %v1682_v34 = vpop.f32.mrb[0].mxu0 }
 0x110   :  { %v586_v26 = vpop.f32.mrb[3].mxu1  ;;  %v1696_v17 = vadd.f32 %v1682_v34, %v1634_v29  ;;  %v1244_v35 = vpop.f32.mrb[1].mxu0 }
 0x111   :  { %v1697_v36 = vadd.f32 %v1244_v35, %v583_v30  ;;  %v1683_v38 = vpop.f32.mrb[2].mxu0 }
 0x112   :  { %v1332_v32 = vadd.f32 %v1696_v17, %v2266_v25  ;;  %v1698_v39 = vadd.f32 %v1683_v38, %v1635_v31  ;;  %v1247_v40 = vpop.f32.mrb[3].mxu0 }
 0x113   :  { %v1330_v41 = vadd.f32 %v1697_v36, %v2266_v25  ;;  %v1699_v53 = vadd.f32 %v1247_v40, %v586_v26 }
 0x114   :  { %v1348_v56 = vmax.f32 %v1332_v32, 0.0  ;;  %v1333_v33 = vadd.f32 %v1698_v39, %v2266_v25 }
 0x115   :  { %v1638_v37 = vpop.f32.mrb[4].mxu1  ;;  %v1346_v4 = vmax.f32 %v1330_v41, 0.0  ;;  %v1331_v5 = vadd.f32 %v1699_v53, %v2266_v25 }
 0x116   :  { %v599_v46 = vpop.f32.mrb[5].mxu1  ;;  %v1364_v49 = vpack.c.bf16 %v1348_v56, %v1348_v56  ;;  %v1349_v50 = vmax.f32 %v1333_v33, 0.0 }
 0x117   :  { %v1639_v51 = vpop.f32.mrb[6].mxu1  ;;  %v1362_v52 = vpack.c.bf16 %v1346_v4, %v1346_v4  ;;  %v1347_v55 = vmax.f32 %v1331_v5, 0.0 }
 0x118   :  { %v602_v57 = vpop.f32.mrb[7].mxu1  ;;  %1381 = vst.msk [vmem:[%s2351_s3 + $0x8] sm:$0xf] %vm1378_vm4, %v1364_v49  ;;  %v1365_v8 = vpack.c.bf16 %v1349_v50, %v1349_v50 }
 0x119   :  { %1379 = vst.msk [vmem:[%s2351_s3] sm:$0xf] %vm1378_vm4, %v1362_v52  ;;  %v1363_v9 = vpack.c.bf16 %v1347_v55, %v1347_v55 }
 0x11a   :  { %1382 = vst.msk [vmem:[%s2351_s3 + $0xc] sm:$0xf] %vm1378_vm4, %v1365_v8  ;;  %v1686_v12 = vpop.f32.mrb[4].mxu0 }
 0x11b   :  { %1380 = vst.msk [vmem:[%s2351_s3 + $0x4] sm:$0xf] %vm1378_vm4, %v1363_v9  ;;  %v1700_v13 = vadd.f32 %v1686_v12, %v1638_v37  ;;  %v1260_v54 = vpop.f32.mrb[5].mxu0 }
 0x11c   :  { %v1701_v6 = vadd.f32 %v1260_v54, %v599_v46  ;;  %v1687_v58 = vpop.f32.mrb[6].mxu0 }
 0x11d   :  { %v1642_v59 = vpop.f32.mrb[8].mxu1  ;;  %v1336_v60 = vadd.f32 %v1700_v13, %v2266_v25  ;;  %v1702_v42 = vadd.f32 %v1687_v58, %v1639_v51  ;;  %v1263_v43 = vpop.f32.mrb[7].mxu0 }
 0x11e   :  { %v615_v22 = vpop.f32.mrb[9].mxu1  ;;  %v1334_v61 = vadd.f32 %v1701_v6, %v2266_v25  ;;  %v1703_v62 = vadd.f32 %v1263_v43, %v602_v57 }
 0x11f   :  { %v1643_v63 = vpop.f32.mrb[10].mxu1  ;;  %v1352_v0 = vmax.f32 %v1336_v60, 0.0  ;;  %v1337_v1 = vadd.f32 %v1702_v42, %v2266_v25 }
 0x120   :  { %v618_v2 = vpop.f32.mrb[11].mxu1  ;;  %v1350_v3 = vmax.f32 %v1334_v61, 0.0  ;;  %v1335_v7 = vadd.f32 %v1703_v62, %v2266_v25 }
 0x121   :  { %v1368_v10 = vpack.c.bf16 %v1352_v0, %v1352_v0  ;;  %v1353_v11 = vmax.f32 %v1337_v1, 0.0 }
 0x122   :  { %v1366_v14 = vpack.c.bf16 %v1350_v3, %v1350_v3  ;;  %v1351_v15 = vmax.f32 %v1335_v7, 0.0 }
 0x123   :  { %1385 = vst.msk [vmem:[%s2351_s3 + $0x18] sm:$0xf] %vm1378_vm4, %v1368_v10  ;;  %v1369_v16 = vpack.c.bf16 %v1353_v11, %v1353_v11 }
 0x124   :  { %1383 = vst.msk [vmem:[%s2351_s3 + $0x10] sm:$0xf] %vm1378_vm4, %v1366_v14  ;;  %v1367_v18 = vpack.c.bf16 %v1351_v15, %v1351_v15  ;;  %v1690_v44 = vpop.f32.mrb[8].mxu0 }
 0x125   :  { %v1646_v19 = vpop.f32.mrb[12].mxu1  ;;  %1386 = vst.msk [vmem:[%s2351_s3 + $0x1c] sm:$0xf] %vm1378_vm4, %v1369_v16  ;;  %v1704_v20 = vadd.f32 %v1690_v44, %v1642_v59  ;;  %v1276_v21 = vpop.f32.mrb[9].mxu0 }
 0x126   :  { %v631_v23 = vpop.f32.mrb[13].mxu1  ;;  %1384 = vst.msk [vmem:[%s2351_s3 + $0x14] sm:$0xf] %vm1378_vm4, %v1367_v18  ;;  %v1705_v24 = vadd.f32 %v1276_v21, %v615_v22  ;;  %v1691_v47 = vpop.f32.mrb[10].mxu0 }
 0x127   :  { %v1647_v48 = vpop.f32.mrb[14].mxu1  ;;  %v1340_v45 = vadd.f32 %v1704_v20, %v2266_v25  ;;  %v1706_v27 = vadd.f32 %v1691_v47, %v1643_v63  ;;  %v1279_v28 = vpop.f32.mrb[11].mxu0 }
 0x128   :  { %v634_v29 = vpop.f32.mrb[15].mxu1  ;;  %v1338_v30 = vadd.f32 %v1705_v24, %v2266_v25  ;;  %v1707_v31 = vadd.f32 %v1279_v28, %v618_v2 }
 0x129   :  { %v1356_v34 = vmax.f32 %v1340_v45, 0.0  ;;  %v1341_v26 = vadd.f32 %v1706_v27, %v2266_v25 }
 0x12a   :  { %v1354_v17 = vmax.f32 %v1338_v30, 0.0  ;;  %v1339_v35 = vadd.f32 %v1707_v31, %v2266_v25 }
 0x12b   :  { %v1372_v36 = vpack.c.bf16 %v1356_v34, %v1356_v34  ;;  %v1357_v38 = vmax.f32 %v1341_v26, 0.0 }
 0x12c   :  { %v1370_v32 = vpack.c.bf16 %v1354_v17, %v1354_v17  ;;  %v1355_v39 = vmax.f32 %v1339_v35, 0.0 }
 0x12d   :  { %1389 = vst.msk [vmem:[%s2351_s3 + $0x28] sm:$0xf] %vm1378_vm4, %v1372_v36  ;;  %v1373_v40 = vpack.c.bf16 %v1357_v38, %v1357_v38  ;;  %v1694_v41 = vpop.f32.mrb[12].mxu0 }
 0x12e   :  { %1387 = vst.msk [vmem:[%s2351_s3 + $0x20] sm:$0xf] %vm1378_vm4, %v1370_v32  ;;  %v1371_v53 = vpack.c.bf16 %v1355_v39, %v1355_v39  ;;  %v1708_v56 = vadd.f32 %v1694_v41, %v1646_v19  ;;  %v1292_v33 = vpop.f32.mrb[13].mxu0 }
 0x12f   :  { %1390 = vst.msk [vmem:[%s2351_s3 + $0x2c] sm:$0xf] %vm1378_vm4, %v1373_v40  ;;  %v1709_v37 = vadd.f32 %v1292_v33, %v631_v23  ;;  %v1695_v4 = vpop.f32.mrb[14].mxu0 }
 0x130   :  { %1388 = vst.msk [vmem:[%s2351_s3 + $0x24] sm:$0xf] %vm1378_vm4, %v1371_v53  ;;  %v1344_v5 = vadd.f32 %v1708_v56, %v2266_v25  ;;  %v1710_v46 = vadd.f32 %v1695_v4, %v1647_v48  ;;  %v1295_v49 = vpop.f32.mrb[15].mxu0 }
 0x131   :  { %v1342_v50 = vadd.f32 %v1709_v37, %v2266_v25  ;;  %v1711_v51 = vadd.f32 %v1295_v49, %v634_v29 }
 0x132   :  { %v1360_v52 = vmax.f32 %v1344_v5, 0.0  ;;  %v1345_v55 = vadd.f32 %v1710_v46, %v2266_v25 }
 0x133   :  { %v1358_v57 = vmax.f32 %v1342_v50, 0.0  ;;  %v1343_v8 = vadd.f32 %v1711_v51, %v2266_v25 }
 0x134   :  { %v1376_v9 = vpack.c.bf16 %v1360_v52, %v1360_v52  ;;  %v1361_v12 = vmax.f32 %v1345_v55, 0.0 }
 0x135   :  { %v1374_v13 = vpack.c.bf16 %v1358_v57, %v1358_v57  ;;  %v1359_v54 = vmax.f32 %v1343_v8, 0.0 }
 0x136   :  { %1393 = vst.msk [vmem:[%s2351_s3 + $0x38] sm:$0xf] %vm1378_vm4, %v1376_v9  ;;  %v1377_v6 = vpack.c.bf16 %v1361_v12, %v1361_v12 }
 0x137   :  { %1391 = vst.msk [vmem:[%s2351_s3 + $0x30] sm:$0xf] %vm1378_vm4, %v1374_v13  ;;  %v1375_v58 = vpack.c.bf16 %v1359_v54, %v1359_v54 }
 0x138   :  { %1394 = vst.msk [vmem:[%s2351_s3 + $0x3c] sm:$0xf] %vm1378_vm4, %v1377_v6 }
 0x139   :  { %1392 = vst.msk [vmem:[%s2351_s3 + $0x34] sm:$0xf] %vm1378_vm4, %v1375_v58 }

// kernel: visual_q_pair_forward.5
= control target key start
LH: loop header
LB: loop body
LE: loop exit
PB: predicated region body
PF: predicated region fallthrough
CT: control target
= control target key end

     0   :  { %v2071_v27 = vmov 1966171168   ;;  %v180_v29 = vlaneseq  ;;  %vm1659_vm0 = vcmask 1041408   ;;  %vm1660_vm1 = vsmask.f32 1280  ;;  %s2520_s1 = inlined_call_operand.vmem [shape: bf16[4,256,128], index: 1, kind: input, shape index: {}]   ;;  %s2521_s0 = inlined_call_operand.vmem [shape: bf16[2,4,4,256], index: 0, kind: input, shape index: {}]   ;;  %s2522_s2 = inlined_call_operand.vmem [shape: f32[1,128], index: 2, kind: input, shape index: {}]   ;;  %s2523_s3 = inlined_call_operand.vmem [shape: bf16[2,3,3,128], index: 3, kind: output, shape index: {}]  }
   0x1   :  { %v2007_v0 = vld [vmem:[%s2520_s1 + $0xc0] sm:$0xff]   ;;  %v2011_v4 = vld [vmem:[%s2520_s1 + $0xc8] sm:$0xff]   ;;  %v2015_v8 = vld [vmem:[%s2520_s1 + $0xd0] sm:$0xff]   ;;  %v178_v28 = vunpack.c.l.s4 %v2071_v27 }
   0x2   :  { %v2008_v1 = vld [vmem:[%s2520_s1 + $0x40] sm:$0xff]   ;;  %1894 = vmatprep.subr.bf16.mxu0 %v2007_v0  ;;  %v2012_v5 = vld [vmem:[%s2520_s1 + $0x48] sm:$0xff]   ;;  %v2016_v9 = vld [vmem:[%s2520_s1 + $0x50] sm:$0xff]   ;;  %v181_v35 = vshrl.u32 %v180_v29, 7 }
   0x3   :  { %v2009_v2 = vld [vmem:[%s2520_s1 + $0x80] sm:$0xff]   ;;  %1922 = vmatprep.subr.bf16.mxu1 %v2008_v1  ;;  %v2013_v6 = vld [vmem:[%s2520_s1 + $0x88] sm:$0xff]   ;;  %v2017_v10 = vld [vmem:[%s2520_s1 + $0x90] sm:$0xff]   ;;  %v179_v34 = vunpack.c.0.s8 %v178_v28 }
   0x4   :  { %v2010_v3 = vld [vmem:[%s2520_s1] sm:$0xff]   ;;  %1895 = vmatpush3.bf16.msra.mxu0 %v2009_v2  ;;  %v2014_v7 = vld [vmem:[%s2520_s1 + $0x8] sm:$0xff]   ;;  %v2018_v11 = vld [vmem:[%s2520_s1 + $0x10] sm:$0xff]  }
   0x5   :  { %1923 = vmatpush3.bf16.msra.mxu1 %v2010_v3  ;;  %1896 = vmatprep.subr.bf16.mxu0 %v2011_v4  ;;  %v2019_v12 = vld [vmem:[%s2520_s1 + $0xd8] sm:$0xff]   ;;  %v2023_v16 = vld [vmem:[%s2520_s1 + $0xe0] sm:$0xff]   ;;  %v2027_v20 = vld [vmem:[%s2520_s1 + $0xe8] sm:$0xff]   ;;  %v2206_v44 = vsub.s32 %v179_v34, %v181_v35 }
   0x6   :  { %1924 = vmatprep.subr.bf16.mxu1 %v2012_v5  ;;  %v2020_v13 = vld [vmem:[%s2520_s1 + $0x58] sm:$0xff]   ;;  %v2024_v17 = vld [vmem:[%s2520_s1 + $0x60] sm:$0xff]   ;;  %v2028_v21 = vld [vmem:[%s2520_s1 + $0x68] sm:$0xff]  }
   0x7   :  { %v2021_v14 = vld [vmem:[%s2520_s1 + $0x98] sm:$0xff]   ;;  %v2025_v18 = vld [vmem:[%s2520_s1 + $0xa0] sm:$0xff]   ;;  %v2029_v22 = vld [vmem:[%s2520_s1 + $0xa8] sm:$0xff]  }
   0x8   :  { %1897 = vmatpush3.bf16.msra.mxu0 %v2013_v6  ;;  %v2022_v15 = vld [vmem:[%s2520_s1 + $0x18] sm:$0xff]   ;;  %v2026_v19 = vld [vmem:[%s2520_s1 + $0x20] sm:$0xff]   ;;  %v2030_v23 = vld [vmem:[%s2520_s1 + $0x28] sm:$0xff]  }
   0x9   :  { %1925 = vmatpush3.bf16.msra.mxu1 %v2014_v7  ;;  %1898 = vmatprep.subr.bf16.mxu0 %v2015_v8  ;;  %v2031_v24 = vld [vmem:[%s2520_s1 + $0xf0] sm:$0xff]   ;;  %v2035_v31 = vld [vmem:[%s2520_s1 + $0xf8] sm:$0xff]   ;;  %v1684_v37 = vld.sshfl [vmem:[%s2521_s0] sm:$0x33 pattern:$0x75316420] }
   0xa   :  { %1926 = vmatprep.subr.bf16.mxu1 %v2016_v9  ;;  %v2032_v25 = vld [vmem:[%s2520_s1 + $0x70] sm:$0xff]   ;;  %v2036_v32 = vld [vmem:[%s2520_s1 + $0x78] sm:$0xff]   ;;  %v2194_v38 = vld.sshfl [vmem:[%s2521_s0 + $0x4] sm:$0x33 pattern:$0x75316420]  ;;  %v34_v39 = vcombine.high %v1684_v37, %v1684_v37  ;;  %v76_v40 = vunpack.i.h.s16 %v1684_v37 }
   0xb   :  { %v2033_v26 = vld [vmem:[%s2520_s1 + $0xb0] sm:$0xff]   ;;  %v2037_v33 = vld [vmem:[%s2520_s1 + $0xb8] sm:$0xff]   ;;  %v2199_v41 = vld.sshfl [vmem:[%s2521_s0 + $0x8] sm:$0x33 pattern:$0x75316420]  ;;  %v2203_v42 = vcombine.high %v2194_v38, %v2194_v38  ;;  %v79_v43 = vunpack.i.h.s16 %v2194_v38 }
   0xc   :  { %1899 = vmatpush3.bf16.msra.mxu0 %v2017_v10  ;;  %v2034_v30 = vld [vmem:[%s2520_s1 + $0x30] sm:$0xff]   ;;  %v2038_v36 = vld [vmem:[%s2520_s1 + $0x38] sm:$0xff]   ;;  %v2039_v45 = vld [vmem:[%s2520_s1 + $0x140] sm:$0xff]   ;;  %v2219_v48 = vcombine.high %v2199_v41, %v2199_v41  ;;  %v82_v49 = vunpack.i.h.s16 %v2199_v41  ;;  %v125_v50 = vunpack.i.h.s16 %v34_v39  ;;  %v1722_v51 = vpack.i.b16 %v34_v39, %v76_v40 }
   0xd   :  { %1927 = vmatpush3.bf16.msra.mxu1 %v2018_v11  ;;  %1900 = vmatprep.subr.bf16.mxu0 %v2019_v12  ;;  %v2040_v46 = vld [vmem:[%s2520_s1 + $0x1c0] sm:$0xff]   ;;  %v1687_v47 = vld.sshfl [vmem:[%s2521_s0 + $0x10] sm:$0x33 pattern:$0x75316420]  ;;  %v1741_v55 = vpack.i.b16 %v2194_v38, %v34_v39  ;;  %v2229_v56 = vpack.i.b16 %v2203_v42, %v79_v43  ;;  %vm2456_vm2 = vmand %vm1659_vm0, %vm1660_vm1 }
   0xe   :  { %1928 = vmatprep.subr.bf16.mxu1 %v2020_v13  ;;  %v2225_v52 = vld.sshfl [vmem:[%s2521_s0 + $0x14] sm:$0x33 pattern:$0x75316420]  ;;  %v58_v53 = vcombine.high %v1687_v47, %v1687_v47  ;;  %v85_v54 = vunpack.i.h.s16 %v1687_v47  ;;  %v127_v60 = vunpack.i.h.s16 %v2219_v48  ;;  %v165_v61 = vpack.i.b16 %v79_v43, %v125_v50  ;;  %v2041_v50 = vld [vmem:[%s2520_s1 + $0x100] sm:$0xff]  }
   0xf   :  { %v2234_v57 = vld.sshfl [vmem:[%s2521_s0 + $0x18] sm:$0x33 pattern:$0x75316420]  ;;  %v2238_v58 = vcombine.high %v2225_v52, %v2225_v52  ;;  %v88_v59 = vunpack.i.h.s16 %v2225_v52  ;;  %v2246_v63 = vpack.i.b16 %v2219_v48, %v82_v49  ;;  %v1743_v0 = vpack.i.b16 %v1687_v47, %v2219_v48 }
  0x10   :  { %1901 = vmatpush3.bf16.msra.mxu0 %v2021_v14  ;;  %v91_v62 = vunpack.i.h.s16 %v2234_v57  ;;  %v1744_v1 = vpack.i.b16 %v58_v53, %v85_v54  ;;  %v168_v3 = vpack.i.b16 %v85_v54, %v127_v60  ;;  %v173_v5 = vcombine.low %v1722_v51, %v165_v61 }
  0x11   :  { %1929 = vmatpush3.bf16.msra.mxu1 %v2022_v15  ;;  %1902 = vmatprep.subr.bf16.mxu0 %v2023_v16  ;;  %v129_v2 = vunpack.i.h.s16 %v2238_v58  ;;  %v2253_v4 = vpack.i.b16 %v2238_v58, %v88_v59  ;;  %v174_v6 = vcombine.low %v2203_v42, %v2246_v63  ;;  %v1745_v7 = vpack.i.b16 %v2234_v57, %v2238_v58 }
  0x12   :  { %1930 = vmatprep.subr.bf16.mxu1 %v2024_v17  ;;  %v418_v8 = vcombine.low %v1684_v37, %v1741_v55  ;;  %v419_v9 = vcombine.low %v2229_v56, %v2199_v41  ;;  %v175_v11 = vcombine.low %v168_v3, %v58_v53  ;;  %v183_v12 = vrot.slane %v173_v5, %v2206_v44  ;;  %v2042_v53 = vld [vmem:[%s2520_s1 + $0x180] sm:$0xff]   ;;  %v2046_v5 = vld [vmem:[%s2520_s1 + $0x188] sm:$0xff]  }
  0x13   :  { %v171_v10 = vpack.i.b16 %v91_v62, %v129_v2  ;;  %v420_v13 = vcombine.low %v1743_v0, %v1744_v1  ;;  %v190_v14 = vrot.slane %v174_v6, %v2206_v44  ;;  %v421_v15 = vcombine.low %v2225_v52, %v1745_v7  ;;  %v2043_v0 = vld [vmem:[%s2520_s1 + $0x148] sm:$0xff]   ;;  %v2048_v6 = vld [vmem:[%s2520_s1 + $0x1d0] sm:$0xff]  }
  0x14   :  { %1903 = vmatpush3.bf16.msra.mxu0 %v2025_v18  ;;  %v428_v16 = vrot.slane %v418_v8, %v2206_v44  ;;  %v435_v17 = vrot.slane %v419_v9, %v2206_v44  ;;  %v2045_v2 = vld [vmem:[%s2520_s1 + $0x108] sm:$0xff]   ;;  %v2047_v7 = vld [vmem:[%s2520_s1 + $0x150] sm:$0xff]  }
  0x15   :  { %1931 = vmatpush3.bf16.msra.mxu1 %v2026_v19  ;;  %1904 = vmatprep.subr.bf16.mxu0 %v2027_v20  ;;  %v176_v18 = vcombine.low %v2253_v4, %v171_v10  ;;  %v197_v19 = vrot.slane %v175_v11, %v2206_v44  ;;  %v442_v20 = vrot.slane %v420_v13, %v2206_v44  ;;  %v2049_v8 = vld [vmem:[%s2520_s1 + $0x110] sm:$0xff]   ;;  %v2052_v13 = vld [vmem:[%s2520_s1 + $0x1d8] sm:$0xff]  }
  0x16   :  { %1932 = vmatprep.subr.bf16.mxu1 %v2028_v21  ;;  %v2271_v21 = vcombine.high %v2234_v57, %v2234_v57  ;;  %v450_v27 = vcombine.low %v428_v16, %v435_v17  ;;  %v2050_v10 = vld [vmem:[%s2520_s1 + $0x190] sm:$0xff]  }
  0x18   :  { %1905 = vmatpush3.bf16.msra.mxu0 %v2029_v22  ;;  %v206_v22 = vcombine.high %v183_v12, %v190_v14  ;;  %v245_v28 = vrot.slane %v2271_v21, %v2206_v44  ;;  %v2278_v29 = vpack.i.b16 %v2271_v21, %v91_v62  ;;  %v460_v37 = vrot.slane %v450_v27, %v2206_v44  ;;  %v2044_v62 = vld [vmem:[%s2520_s1 + $0x1c8] sm:$0xff]  }
  0x19   :  { %1933 = vmatpush3.bf16.msra.mxu1 %v2030_v23  ;;  %1906 = vmatprep.subr.bf16.mxu0 %v2031_v24  ;;  %v449_v23 = vrot.slane %v421_v15, %v2206_v44  ;;  %v451_v24 = vcombine.high %v428_v16, %v435_v17  ;;  %v2053_v15 = vld [vmem:[%s2520_s1 + $0x118] sm:$0xff]   ;;  %v1807_v16 = vpack.i.b16 %v2199_v41, %v2203_v42 }
  0x1a   :  { %1934 = vmatprep.subr.bf16.mxu1 %v2032_v25  ;;  %v205_v25 = vcombine.low %v183_v12, %v190_v14  ;;  %v246_v40 = vcombine.high %v245_v28, %v245_v28  ;;  %v490_v43 = vrot.slane %v2278_v29, %v2206_v44  ;;  %v253_v11 = vrot.slane %v245_v28, %v2206_v44  ;;  %v2051_v14 = vld [vmem:[%s2520_s1 + $0x158] sm:$0xff]  }
  0x1b   :  { %v1076_v12 = vunpack.i.h.s16 %v2203_v42  ;;  %v2054_v17 = vld [vmem:[%s2520_s1 + $0x198] sm:$0xff]   ;;  %v2055_v42 = vld [vmem:[%s2520_s1 + $0x160] sm:$0xff]  }
  0x1c   :  { %1907 = vmatpush3.bf16.msra.mxu0 %v2033_v26  ;;  %v204_v26 = vrot.slane %v176_v18, %v2206_v44  ;;  %v491_v54 = vcombine.high %v490_v43, %v490_v43  ;;  %v260_v1 = vrot.slane %v246_v40, %v2206_v44  ;;  %v498_v9 = vrot.slane %v490_v43, %v2206_v44  ;;  %v2063_v43 = vld [vmem:[%s2520_s1 + $0x170] sm:$0xff]  }
  0x1d   :  { %1935 = vmatpush3.bf16.msra.mxu1 %v2034_v30  ;;  %1908 = vmatprep.subr.bf16.mxu0 %v2035_v31  ;;  %v222_v30 = vrot.slane %v206_v22, %v2206_v44  ;;  %v453_v31 = vcombine.high %v442_v20, %v449_v23  ;;  %v1126_v18 = vpack.i.b16 %v82_v49, %v1076_v12  ;;  %v2058_v22 = vld [vmem:[%s2520_s1 + $0x1a0] sm:$0xff]  }
  0x1e   :  { %1936 = vmatprep.subr.bf16.mxu1 %v2036_v32  ;;  %v467_v32 = vrot.slane %v451_v24, %v2206_v44  ;;  %v208_v34 = vcombine.high %v197_v19, %v204_v26  ;;  %v207_v35 = vcombine.low %v197_v19, %v204_v26  ;;  %v505_v3 = vrot.slane %v491_v54, %v2206_v44  ;;  %v2056_v19 = vld [vmem:[%s2520_s1 + $0x1e0] sm:$0xff]   ;;  %v1771_v24 = vld.sshfl [vmem:[%s2521_s0 + $0xc] sm:$0x33 pattern:$0x75316420] }
  0x1f   :  { %v481_v39 = vrot.slane %v453_v31, %v2206_v44  ;;  %v1134_v41 = vcombine.low %v2229_v56, %v1126_v18  ;;  %v2057_v49 = vld [vmem:[%s2520_s1 + $0x120] sm:$0xff]   ;;  %v1088_v56 = vunpack.i.h.s16 %v2271_v21  ;;  %v690_v26 = vcombine.high %v1771_v24, %v1771_v24  ;;  %v2062_v31 = vld [vmem:[%s2520_s1 + $0x1a8] sm:$0xff]  }
  0x20   :  { %1909 = vmatpush3.bf16.msra.mxu0 %v2037_v33  ;;  %v215_v33 = vrot.slane %v205_v25, %v2206_v44  ;;  %v1774_v25 = vld.sshfl [vmem:[%s2521_s0 + $0x1c] sm:$0x33 pattern:$0x75316420]  ;;  %v776_v27 = vcombine.low %v2246_v63, %v1771_v24  ;;  %v2061_v63 = vld [vmem:[%s2520_s1 + $0x128] sm:$0xff]  }
  0x21   :  { %1937 = vmatpush3.bf16.msra.mxu1 %v2038_v36  ;;  %1950 = vmatprep.subr.bf16.mxu0 %v2039_v45  ;;  %v452_v36 = vcombine.low %v442_v20, %v449_v23  ;;  %v236_v45 = vrot.slane %v208_v34, %v2206_v44  ;;  %v483_v51 = vcombine.low %v467_v32, %v481_v39  ;;  %v2060_v23 = vld [vmem:[%s2520_s1 + $0x1e8] sm:$0xff]   ;;  %v1082_v40 = vunpack.i.h.s16 %v690_v26 }
  0x22   :  { %1978 = vmatprep.subr.bf16.mxu1 %v2040_v46  ;;  %v229_v46 = vrot.slane %v207_v35, %v2206_v44  ;;  %v775_v20 = vcombine.low %v2194_v38, %v1807_v16  ;;  %v2059_v38 = vld [vmem:[%s2520_s1 + $0x168] sm:$0xff]   ;;  %v1811_v32 = vpack.i.b16 %v1774_v25, %v2271_v21  ;;  %v1144_v34 = vrot.slane %v1134_v41, %v2206_v44 }
  0x23   :  { %v474_v47 = vrot.slane %v452_v36, %v2206_v44  ;;  %v238_v55 = vcombine.low %v222_v30, %v236_v45  ;;  %638 = vmatprep.mubr.bf16.mxu1 %v483_v51  ;;  %v1080_v30 = vunpack.i.h.s16 %v1771_v24  ;;  %v714_v35 = vcombine.high %v1774_v25, %v1774_v25  ;;  %v2064_v36 = vld [vmem:[%s2520_s1 + $0x1f0] sm:$0xff]  }
  0x24   :  { %v237_v60 = vcombine.low %v215_v33, %v229_v46  ;;  %v785_v28 = vrot.slane %v775_v20, %v2206_v44  ;;  %v1089_v33 = vunpack.i.h.s16 %v1774_v25  ;;  %v792_v39 = vrot.slane %v776_v27, %v2206_v44 }
  0x25   :  { %v482_v61 = vcombine.low %v460_v37, %v474_v47  ;;  %393 = vmatprep.mubr.bf16.mxu0 %v238_v55  ;;  %v1809_v37 = vpack.i.b16 %v2225_v52, %v690_v26  ;;  %v1874_v21 = vpack.i.b16 %v690_v26, %v1080_v30  ;;  %v778_v45 = vcombine.low %v2234_v57, %v1811_v32  ;;  %v2065_v52 = vld [vmem:[%s2520_s1 + $0x130] sm:$0xff]  }
  0x26   :  { %394 = vmatmul.mubr.bf16.vlgmr.msra.gmra.mrb[0].mxu0 %v237_v60  ;;  %v1132_v46 = vpack.i.b16 %v1089_v33, %v1088_v56  ;;  %v1812_v47 = vpack.i.b16 %v714_v35, %v1089_v33  ;;  %v808_v54 = vcombine.high %v785_v28, %v792_v39  ;;  %v1129_v55 = vpack.i.b16 %v88_v59, %v1082_v40  ;;  %v2066_v60 = vld [vmem:[%s2520_s1 + $0x1b0] sm:$0xff]   ;;  %v2068_v59 = vld [vmem:[%s2520_s1 + $0x1f8] sm:$0xff]  }
  0x27   :  { %639 = vmatmul.mubr.bf16.vlgmr.msra.gmra.mrb[0].mxu1 %v482_v61  ;;  %1951 = vmatpush3.bf16.msra.mxu0 %v2041_v50  ;;  %v1206_v50 = vrot.slane %v714_v35, %v2206_v44  ;;  %v777_v51 = vcombine.low %v1809_v37, %v2253_v4  ;;  %v806_v61 = vrot.slane %v778_v45, %v2206_v44 }
  0x28   :  { %1979 = vmatpush3.bf16.msra.mxu1 %v2042_v53  ;;  %1952 = vmatprep.subr.bf16.mxu0 %v2043_v0  ;;  %v807_v53 = vcombine.low %v785_v28, %v792_v39  ;;  %v1135_v57 = vcombine.low %v2219_v48, %v1874_v21  ;;  %v847_v0 = vrot.slane %v1812_v47, %v2206_v44  ;;  %v2067_v48 = vld [vmem:[%s2520_s1 + $0x178] sm:$0xff]  }
  0x29   :  { %1980 = vmatprep.subr.bf16.mxu1 %v2044_v62  ;;  %401 = vmatprep.mubr.bf16.mxu0 %v260_v1  ;;  %v1137_v62 = vcombine.low %v2278_v29, %v1132_v46  ;;  %v799_v4 = vrot.slane %v777_v51, %v2206_v44  ;;  %v1136_v1 = vcombine.low %v1129_v55, %v2238_v58  ;;  %v2070_v58 = vld [vmem:[%s2520_s1 + $0x1b8] sm:$0xff]  }
  0x2a   :  { %646 = vmatprep.mubr.bf16.mxu1 %v505_v3  ;;  %v824_v29 = vrot.slane %v808_v54, %v2206_v44  ;;  %v1207_v12 = vcombine.high %v1206_v50, %v1206_v50  ;;  %v855_v56 = vrot.slane %v847_v0, %v2206_v44  ;;  %v1214_v25 = vrot.slane %v1206_v50, %v2206_v44 }
  0x2b   :  { %1953 = vmatpush3.bf16.msra.mxu0 %v2045_v2  ;;  %v1151_v2 = vrot.slane %v1135_v57, %v2206_v44  ;;  %v1165_v3 = vrot.slane %v1137_v62, %v2206_v44 }
  0x2c   :  { %1981 = vmatpush3.bf16.msra.mxu1 %v2046_v5  ;;  %1954 = vmatprep.subr.bf16.mxu0 %v2047_v7  ;;  %v809_v5 = vcombine.low %v799_v4, %v806_v61  ;;  %v1158_v7 = vrot.slane %v1136_v1, %v2206_v44  ;;  %v1221_v24 = vrot.slane %v1207_v12, %v2206_v44 }
  0x2d   :  { %1982 = vmatprep.subr.bf16.mxu1 %v2048_v6  ;;  %v810_v6 = vcombine.high %v799_v4, %v806_v61 }
  0x2e   :  { %402 = vmatmul.mubr.bf16.gmra.mrb[4].mxu0 %v253_v11  ;;  %v848_v11 = vcombine.high %v847_v0, %v847_v0  ;;  %v1169_v16 = vcombine.high %v1158_v7, %v1165_v3  ;;  %v831_v18 = vrot.slane %v809_v5, %v2206_v44 }
  0x2f   :  { %647 = vmatmul.mubr.bf16.gmra.mrb[4].mxu1 %v498_v9  ;;  %1955 = vmatpush3.bf16.msra.mxu0 %v2049_v8  ;;  %v817_v8 = vrot.slane %v807_v53, %v2206_v44  ;;  %v1166_v9 = vcombine.low %v1144_v34, %v1151_v2 }
  0x30   :  { %1983 = vmatpush3.bf16.msra.mxu1 %v2050_v10  ;;  %1956 = vmatprep.subr.bf16.mxu0 %v2051_v14  ;;  %v1167_v10 = vcombine.high %v1144_v34, %v1151_v2  ;;  %v838_v14 = vrot.slane %v810_v6, %v2206_v44  ;;  %v1197_v20 = vrot.slane %v1169_v16, %v2206_v44  ;;  %v1892_v6 = vld [vmem:[%s2522_s2] ss:$0 sm:$0xff] }
  0x31   :  { %1984 = vmatprep.subr.bf16.mxu1 %v2052_v13  ;;  %v2069_v13 = vld [vmem:[%s2520_s1 + $0x138] sm:$0xff]   ;;  %v839_v41 = vcombine.low %v817_v8, %v831_v18 }
  0x33   :  { %1957 = vmatpush3.bf16.msra.mxu0 %v2053_v15  ;;  %v1168_v15 = vcombine.low %v1158_v7, %v1165_v3 }
  0x34   :  { %1985 = vmatpush3.bf16.msra.mxu1 %v2054_v17  ;;  %1958 = vmatprep.subr.bf16.mxu0 %v2055_v42  ;;  %v1183_v17 = vrot.slane %v1167_v10, %v2206_v44  ;;  %v840_v42 = vcombine.low %v824_v29, %v838_v14 }
  0x35   :  { %1986 = vmatprep.subr.bf16.mxu1 %v2056_v19  ;;  %v1176_v19 = vrot.slane %v1166_v9, %v2206_v44 }
  0x36   :  { %995 = vmatprep.mubr.bf16.mxu0 %v840_v42 }
  0x37   :  { %1959 = vmatpush3.bf16.msra.mxu0 %v2057_v49  ;;  %v862_v49 = vrot.slane %v848_v11, %v2206_v44 }
  0x38   :  { %1987 = vmatpush3.bf16.msra.mxu1 %v2058_v22  ;;  %1960 = vmatprep.subr.bf16.mxu0 %v2059_v38  ;;  %v1190_v22 = vrot.slane %v1168_v15, %v2206_v44 }
  0x39   :  { %1988 = vmatprep.subr.bf16.mxu1 %v2060_v23  ;;  %v1199_v23 = vcombine.low %v1183_v17, %v1197_v20 }
  0x3a   :  { %v1198_v38 = vcombine.low %v1176_v19, %v1190_v22 }
  0x3b   :  { %1961 = vmatpush3.bf16.msra.mxu0 %v2061_v63  ;;  %1354 = vmatprep.mubr.bf16.mxu1 %v1199_v23 }
  0x3c   :  { %1989 = vmatpush3.bf16.msra.mxu1 %v2062_v31  ;;  %1962 = vmatprep.subr.bf16.mxu0 %v2063_v43 }
  0x3d   :  { %1990 = vmatprep.subr.bf16.mxu1 %v2064_v36 }
  0x3f   :  { %1963 = vmatpush3.bf16.msra.mxu0 %v2065_v52 }
  0x40   :  { %1991 = vmatpush3.bf16.msra.mxu1 %v2066_v60  ;;  %1964 = vmatprep.subr.bf16.mxu0 %v2067_v48 }
  0x41   :  { %1992 = vmatprep.subr.bf16.mxu1 %v2068_v59 }
  0x43   :  { %1965 = vmatpush3.bf16.msra.mxu0 %v2069_v13 }
  0x44   :  { %1993 = vmatpush3.bf16.msra.mxu1 %v2070_v58 }
  0x46   :  { %996 = vmatmul.mubr.bf16.vlgmr.msra.gmra.mrb[8].mxu0 %v839_v41 }
  0x47   :  { %1355 = vmatmul.mubr.bf16.vlgmr.msra.gmra.mrb[8].mxu1 %v1198_v38  ;;  %1003 = vmatprep.mubr.bf16.mxu0 %v862_v49 }
  0x48   :  { %1362 = vmatprep.mubr.bf16.mxu1 %v1221_v24 }
  0x4e   :  { %1004 = vmatmul.mubr.bf16.gmra.mrb[12].mxu0 %v855_v56 }
  0x4f   :  { %1363 = vmatmul.mubr.bf16.gmra.mrb[12].mxu1 %v1214_v25 }
  0xf9   :  { %v1910_v27 = vpop.f32.mrb[0].mxu0 }
  0xfa   :  { %v1938_v26 = vpop.f32.mrb[0].mxu1  ;;  %v1911_v30 = vpop.f32.mrb[1].mxu0 }
  0xfb   :  { %v1939_v28 = vpop.f32.mrb[1].mxu1  ;;  %v1912_v33 = vadd.f32 %v1911_v30, %v1910_v27  ;;  %v1913_v34 = vpop.f32.mrb[2].mxu0 }
  0xfc   :  { %v1940_v31 = vadd.f32 %v1939_v28, %v1938_v26  ;;  %v1941_v32 = vpop.f32.mrb[2].mxu1  ;;  %v1914_v63 = vpop.f32.mrb[3].mxu0 }
  0xfd   :  { %v1942_v35 = vpop.f32.mrb[3].mxu1  ;;  %v1915_v39 = vadd.f32 %v1914_v63, %v1913_v34 }
  0xfe   :  { %v1943_v36 = vadd.f32 %v1942_v35, %v1941_v32  ;;  %v641_v37 = vadd.f32 %v1940_v31, %v1912_v33 }
 0x100   :  { %v644_v40 = vadd.f32 %v1943_v36, %v1915_v39 }
 0x101   :  { %v1916_v43 = vpop.f32.mrb[4].mxu0 }
 0x102   :  { %v1944_v21 = vpop.f32.mrb[4].mxu1  ;;  %v1917_v46 = vpop.f32.mrb[5].mxu0 }
 0x103   :  { %v1945_v45 = vpop.f32.mrb[5].mxu1  ;;  %v1918_v51 = vadd.f32 %v1917_v46, %v1916_v43  ;;  %v1919_v53 = vpop.f32.mrb[6].mxu0 }
 0x104   :  { %v1946_v47 = vadd.f32 %v1945_v45, %v1944_v21  ;;  %v1947_v50 = vpop.f32.mrb[6].mxu1  ;;  %v1920_v55 = vpop.f32.mrb[7].mxu0 }
 0x105   :  { %v1948_v54 = vpop.f32.mrb[7].mxu1 }
 0x106   :  { %v649_v60 = vadd.f32 %v1946_v47, %v1918_v51 }
 0x119   :  { %v1966_v61 = vpop.f32.mrb[8].mxu0 }
 0x11a   :  { %v1994_v57 = vpop.f32.mrb[8].mxu1  ;;  %v1967_v62 = vpop.f32.mrb[9].mxu0 }
 0x11b   :  { %v1995_v0 = vpop.f32.mrb[9].mxu1  ;;  %v1968_v52 = vadd.f32 %v1967_v62, %v1966_v61  ;;  %v1969_v4 = vpop.f32.mrb[10].mxu0 }
 0x11c   :  { %v1996_v59 = vadd.f32 %v1995_v0, %v1994_v57  ;;  %v1997_v1 = vpop.f32.mrb[10].mxu1  ;;  %v1970_v48 = vpop.f32.mrb[11].mxu0 }
 0x11d   :  { %v1998_v29 = vpop.f32.mrb[11].mxu1  ;;  %v1011_v2 = vadd.f32 %v1968_v52, %v641_v37  ;;  %v1971_v3 = vadd.f32 %v1970_v48, %v1969_v4 }
 0x11e   :  { %v1999_v5 = vadd.f32 %v1998_v29, %v1997_v1 }
 0x11f   :  { %v1370_v7 = vadd.f32 %v1996_v59, %v1011_v2  ;;  %v1012_v8 = vadd.f32 %v1971_v3, %v644_v40 }
 0x121   :  { %v1380_v58 = vadd.f32 %v1892_v6, %v1370_v7  ;;  %v1371_v9 = vadd.f32 %v1999_v5, %v1012_v8  ;;  %v1972_v10 = vpop.f32.mrb[12].mxu0 }
 0x122   :  { %v2000_v11 = vpop.f32.mrb[12].mxu1  ;;  %v1973_v12 = vpop.f32.mrb[13].mxu0 }
 0x123   :  { %v2001_v13 = vpop.f32.mrb[13].mxu1  ;;  %v1383_v14 = vmax.f32 %v1380_v58, 0.0  ;;  %v1381_v15 = vadd.f32 %v1892_v6, %v1371_v9  ;;  %v1974_v16 = vadd.f32 %v1973_v12, %v1972_v10  ;;  %v1975_v18 = vpop.f32.mrb[14].mxu0 }
 0x124   :  { %v2002_v17 = vadd.f32 %v2001_v13, %v2000_v11  ;;  %v2003_v19 = vpop.f32.mrb[14].mxu1  ;;  %v1976_v42 = vpop.f32.mrb[15].mxu0 }
 0x125   :  { %v2004_v20 = vpop.f32.mrb[15].mxu1  ;;  %v1389_v22 = vcombine.high %v1383_v14, %v1383_v14  ;;  %v1396_v41 = vrot.slane %v1383_v14, %v2206_v44  ;;  %v1384_v49 = vmax.f32 %v1381_v15, 0.0  ;;  %v1013_v23 = vadd.f32 %v1974_v16, %v649_v60  ;;  %v1665_v14 = vld [vmem:[%s2523_s3 + $0x2] sm:$0x3]  ;;  %v1668_v16 = vld [vmem:[%s2523_s3 + $0x4] sm:$0x3] }
 0x127   :  { %v1403_v38 = vrot.slane %v1389_v22, %v2206_v44  ;;  %v1404_v24 = vcombine.high %v1396_v41, %v1396_v41  ;;  %v1412_v56 = vrot.slane %v1396_v41, %v2206_v44  ;;  %v1438_v25 = vcombine.high %v1384_v49, %v1384_v49 }
 0x128   :  { %v1445_v26 = vrot.slane %v1384_v49, %v2206_v44  ;;  %v1372_v27 = vadd.f32 %v2002_v17, %v1013_v23  ;;  %v1671_v49 = vld [vmem:[%s2523_s3 + $0x6] sm:$0x3] }
 0x129   :  { %v1405_v28 = vcombine.high %v1403_v38, %v1403_v38  ;;  %v1419_v30 = vrot.slane %v1403_v38, %v2206_v44  ;;  %v1426_v31 = vrot.slane %v1404_v24, %v2206_v44  ;;  %v1434_v32 = vcombine.high %v1412_v56, %v1412_v56 }
 0x12a   :  { %v1452_v33 = vrot.slane %v1438_v25, %v2206_v44  ;;  %v1453_v34 = vcombine.high %v1445_v26, %v1445_v26  ;;  %v1461_v35 = vrot.slane %v1445_v26, %v2206_v44  ;;  %v1382_v63 = vadd.f32 %v1892_v6, %v1372_v27  ;;  %v1662_v6 = vld [vmem:[%s2523_s3] sm:$0x3]  ;;  %v1674_v26 = vld [vmem:[%s2523_s3 + $0x8] sm:$0x3] }
 0x12b   :  { %v1433_v36 = vrot.slane %v1405_v28, %v2206_v44  ;;  %v1436_v37 = vcombine.high %v1426_v31, %v1426_v31  ;;  %v1509_v39 = vcombine.low %v1412_v56, %v1426_v31  ;;  %v1523_v40 = vrot.slane %v1434_v32, %v2206_v44 }
 0x12c   :  { %v1454_v21 = vcombine.high %v1452_v33, %v1452_v33  ;;  %v1468_v43 = vrot.slane %v1452_v33, %v2206_v44  ;;  %v1475_v45 = vrot.slane %v1453_v34, %v2206_v44  ;;  %v1483_v46 = vcombine.high %v1461_v35, %v1461_v35 }
 0x12d   :  { %v1516_v47 = vrot.slane %v1509_v39, %v2206_v44  ;;  %v1532_v50 = vcombine.low %v1436_v37, %v1419_v30  ;;  %v1546_v51 = vrot.slane %v1433_v36, %v2206_v44  ;;  %v1893_v53 = vcombine.high %v1419_v30, %v1433_v36 }
 0x12e   :  { %v1482_v54 = vrot.slane %v1454_v21, %v2206_v44  ;;  %v1484_v55 = vcombine.high %v1468_v43, %v1468_v43  ;;  %v1485_v60 = vcombine.high %v1475_v45, %v1475_v45  ;;  %v1569_v61 = vrot.slane %v1461_v35, %v2206_v44  ;;  %v1677_v35 = vld [vmem:[%s2523_s3 + $0xa] sm:$0x3] }
 0x12f   :  { %v1524_v57 = vcombine.low %v1516_v47, %v1523_v40  ;;  %v1539_v62 = vrot.slane %v1532_v50, %v2206_v44  ;;  %v1562_v0 = vrot.slane %v1893_v53, %v2206_v44  ;;  %v1578_v52 = vcombine.low %v1475_v45, %v1483_v46 }
 0x130   :  { %v1592_v59 = vrot.slane %v1485_v60, %v2206_v44  ;;  %v1601_v4 = vcombine.low %v1468_v43, %v1482_v54  ;;  %v1385_v1 = vmax.f32 %v1382_v63, 0.0  ;;  %v1615_v8 = vrot.slane %v1484_v55, %v2206_v44 }
 0x131   :  { %v1531_v48 = vrot.slane %v1524_v57, %v2206_v44  ;;  %v1547_v29 = vcombine.low %v1539_v62, %v1546_v51  ;;  %v1570_v2 = vcombine.low %v1562_v0, %v1569_v61  ;;  %v1585_v3 = vrot.slane %v1578_v52, %v2206_v44 }
 0x132   :  { %v1608_v7 = vrot.slane %v1601_v4, %v2206_v44  ;;  %v1486_v58 = vcombine.high %v1482_v54, %v1482_v54  ;;  %v1493_v9 = vrot.slane %v1385_v1, %v2206_v44 }
 0x133   :  { %v1554_v10 = vrot.slane %v1547_v29, %v2206_v44  ;;  %v1653_v11 = vpack.c.bf16 %v1531_v48, %v1531_v48  ;;  %v1577_v12 = vrot.slane %v1570_v2, %v2206_v44  ;;  %v1593_v13 = vcombine.low %v1585_v3, %v1592_v59 }
 0x134   :  { %v1616_v15 = vcombine.low %v1608_v7, %v1615_v8  ;;  %v1494_v17 = vcombine.high %v1493_v9, %v1493_v9  ;;  %v1501_v18 = vrot.slane %v1493_v9, %v2206_v44 }
 0x135   :  { %v1654_v19 = vpack.c.bf16 %v1554_v10, %v1554_v10  ;;  %v1663_v42 = vsel %vm2456_vm2, %v1653_v11, %v1662_v6  ;;  %v1600_v20 = vrot.slane %v1593_v13, %v2206_v44  ;;  %v1655_v22 = vpack.c.bf16 %v1577_v12, %v1577_v12 }
 0x136   :  { %1664 = vst [vmem:[%s2523_s3] sm:$0x3] %v1663_v42  ;;  %v1623_v41 = vrot.slane %v1616_v15, %v2206_v44  ;;  %v1508_v23 = vrot.slane %v1494_v17, %v2206_v44  ;;  %v1624_v38 = vcombine.low %v1486_v58, %v1501_v18 }
 0x137   :  { %v1666_v24 = vsel %vm2456_vm2, %v1654_v19, %v1665_v14  ;;  %v1656_v56 = vpack.c.bf16 %v1600_v20, %v1600_v20  ;;  %v1669_v25 = vsel %vm2456_vm2, %v1655_v22, %v1668_v16 }
 0x138   :  { %1667 = vst [vmem:[%s2523_s3 + $0x2] sm:$0x3] %v1666_v24  ;;  %v1657_v27 = vpack.c.bf16 %v1623_v41, %v1623_v41  ;;  %1670 = vst [vmem:[%s2523_s3 + $0x4] sm:$0x3] %v1669_v25  ;;  %v1631_v28 = vrot.slane %v1624_v38, %v2206_v44  ;;  %v1638_v30 = vrot.slane %v1508_v23, %v2206_v44 }
 0x139   :  { %v1672_v31 = vsel %vm2456_vm2, %v1656_v56, %v1671_v49 }
 0x13a   :  { %1673 = vst [vmem:[%s2523_s3 + $0x6] sm:$0x3] %v1672_v31  ;;  %v1675_v32 = vsel %vm2456_vm2, %v1657_v27, %v1674_v26  ;;  %v1639_v33 = vcombine.low %v1631_v28, %v1638_v30 }
 0x13b   :  { %1676 = vst [vmem:[%s2523_s3 + $0x8] sm:$0x3] %v1675_v32 }
 0x13c   :  { %v1646_v34 = vrot.slane %v1639_v33, %v2206_v44 }
 0x13e   :  { %v1658_v63 = vpack.c.bf16 %v1646_v34, %v1646_v34 }
 0x140   :  { %v1678_v36 = vsel %vm2456_vm2, %v1658_v63, %v1677_v35 }
 0x141   :  { %1679 = vst [vmem:[%s2523_s3 + $0xa] sm:$0x3] %v1678_v36 }

// kernel: visual_q_pair_forward.7
= control target key start
LH: loop header
LB: loop body
LE: loop exit
PB: predicated region body
PF: predicated region fallthrough
CT: control target
= control target key end

     0   :  { %v416_v0 = vmov 0.0   ;;  %vm417_vm0 = vmmov 0   ;;  %vm180_vm1 = vcmask 523264   ;;  %vm308_vm2 = vcmask 91136   ;;  %s545_s1 = inlined_call_operand.vmem [shape: bf16[128,64], index: 1, kind: input, shape index: {}]   ;;  %s546_s3 = inlined_call_operand.vmem [shape: bf16[64,64], index: 3, kind: input, shape index: {}]   ;;  %s547_s0 = inlined_call_operand.vmem [shape: bf16[2,128], index: 0, kind: input, shape index: {}]   ;;  %s548_s5 = inlined_call_operand.vmem [shape: bf16[64,12], index: 5, kind: input, shape index: {}]   ;;  %s549_s2 = inlined_call_operand.vmem [shape: f32[1,64], index: 2, kind: input, shape index: {}]   ;;  %s550_s4 = inlined_call_operand.vmem [shape: f32[1,64], index: 4, kind: input, shape index: {}]   ;;  %s551_s6 = inlined_call_operand.vmem [shape: f32[1,12], index: 6, kind: input, shape index: {}]   ;;  %s552_s7 = inlined_call_operand.vmem [shape: f32[2,12], index: 7, kind: output, shape index: {}]  }
   0x1   :  { %354 = vmatprep.subr.bf16.mxu0 %v416_v0  ;;  %v400_v1 = vld [vmem:[%s545_s1] sm:$0xff]   ;;  %370 = vmatprep.mubr.msk.bf16.mxu0 %vm417_vm0, %v416_v0  ;;  %v401_v2 = vld [vmem:[%s545_s1 + $0x8] sm:$0xff]   ;;  %v402_v3 = vld [vmem:[%s545_s1 + $0x10] sm:$0xff]  }
   0x2   :  { %374 = vmatprep.subr.bf16.mxu1 %v416_v0  ;;  %382 = vmatprep.mubr.msk.bf16.mxu1 %vm417_vm0, %v416_v0  ;;  %v408_v4 = vld [vmem:[%s546_s3] sm:$0xff]   ;;  %v403_v5 = vld [vmem:[%s545_s1 + $0x18] sm:$0xff]   ;;  %v409_v6 = vld [vmem:[%s546_s3 + $0x8] sm:$0xff]  }
   0x3   :  { %355 = vmatpush3.bf16.msra.mxu0 %v400_v1  ;;  %375 = vmatpush3.bf16.msra.mxu1 %v408_v4  ;;  %v404_v7 = vld [vmem:[%s545_s1 + $0x20] sm:$0xff]   ;;  %v405_v8 = vld [vmem:[%s545_s1 + $0x28] sm:$0xff]   ;;  %v406_v9 = vld [vmem:[%s545_s1 + $0x30] sm:$0xff]  }
   0x4   :  { %356 = vmatprep.subr.bf16.mxu0 %v416_v0  ;;  %376 = vmatprep.subr.bf16.mxu1 %v416_v0  ;;  %v407_v10 = vld [vmem:[%s545_s1 + $0x38] sm:$0xff]   ;;  %v27_v11 = vld [vmem:[%s547_s0] sm:$0x1]  ;;  %v410_v12 = vld [vmem:[%s546_s3 + $0x10] sm:$0xff]  }
   0x5   :  { %v411_v13 = vld [vmem:[%s546_s3 + $0x18] sm:$0xff]   ;;  %v314_v14 = vld [vmem:[%s549_s2] ss:$0 sm:$0xff]  ;;  %v413_v23 = vld [vmem:[%s548_s5 + $0x8] sm:$0xff]  }
   0x6   :  { %v412_v21 = vld [vmem:[%s548_s5] sm:$0xff]   ;;  %v414_v24 = vld [vmem:[%s548_s5 + $0x10] sm:$0xff]   ;;  %v415_v25 = vld [vmem:[%s548_s5 + $0x18] sm:$0xff]  }
   0x7   :  { %357 = vmatpush3.bf16.msra.mxu0 %v401_v2  ;;  %377 = vmatpush3.bf16.msra.mxu1 %v409_v6  ;;  %v323_v26 = vld [vmem:[%s550_s4] ss:$0 sm:$0xff] }
   0x8   :  { %358 = vmatprep.subr.bf16.mxu0 %v416_v0  ;;  %378 = vmatprep.subr.bf16.mxu1 %v416_v0  ;;  %v329_v34 = vld [vmem:[%s551_s6] ss:$0 sm:$0xff] }
   0xb   :  { %359 = vmatpush3.bf16.msra.mxu0 %v402_v3  ;;  %379 = vmatpush3.bf16.msra.mxu1 %v410_v12 }
   0xc   :  { %360 = vmatprep.subr.bf16.mxu0 %v416_v0  ;;  %380 = vmatprep.subr.bf16.mxu1 %v416_v0 }
   0xf   :  { %361 = vmatpush3.bf16.msra.mxu0 %v403_v5  ;;  %381 = vmatpush3.bf16.msra.mxu1 %v411_v13 }
  0x10   :  { %362 = vmatprep.subr.bf16.mxu0 %v416_v0  ;;  %386 = vmatprep.subr.bf16.mxu1 %v416_v0 }
  0x13   :  { %363 = vmatpush3.bf16.msra.mxu0 %v404_v7 }
  0x14   :  { %364 = vmatprep.subr.bf16.mxu0 %v416_v0 }
  0x17   :  { %365 = vmatpush3.bf16.msra.mxu0 %v405_v8 }
  0x18   :  { %366 = vmatprep.subr.bf16.mxu0 %v416_v0 }
  0x1b   :  { %367 = vmatpush3.bf16.msra.mxu0 %v406_v9 }
  0x1c   :  { %368 = vmatprep.subr.bf16.mxu0 %v416_v0 }
  0x1f   :  { %369 = vmatpush3.bf16.msra.mxu0 %v407_v10 }
  0x22   :  { %371 = vmatmul.mubr.bf16.vlgmr.msra.gmra.mrb[0].mxu0 %v27_v11 }
  0xf5   :  { %v133_v15 = vpop.f32.mrb[0].mxu0 }
  0xf6   :  { %v134_v16 = vadd.f32 %v314_v14, %v133_v15  ;;  %v372_v17 = vpop.f32.mrb[1].mxu0 }
  0xf7   :  { %v136_v18 = vpop.f32.mrb[2].mxu0 }
  0xf8   :  { %v139_v19 = vmax.f32 %v134_v16, 0.0  ;;  %v373_v20 = vpop.f32.mrb[3].mxu0 }
  0xfa   :  { %v140_v22 = vpack.c.bf16 %v139_v19, %v139_v19 }
  0xfc   :  { %383 = vmatmul.mubr.msk.bf16.vlgmr.msra.gmra.mrb[0].mxu1 %vm180_vm1, %v140_v22 }
  0xfd   :  { %387 = vmatpush3.bf16.msra.mxu1 %v412_v21  ;;  %394 = vmatprep.mubr.msk.bf16.mxu1 %vm417_vm0, %v416_v0 }
  0xfe   :  { %388 = vmatprep.subr.bf16.mxu1 %v416_v0 }
 0x101   :  { %389 = vmatpush3.bf16.msra.mxu1 %v413_v23 }
 0x102   :  { %390 = vmatprep.subr.bf16.mxu1 %v416_v0 }
 0x105   :  { %391 = vmatpush3.bf16.msra.mxu1 %v414_v24 }
 0x106   :  { %392 = vmatprep.subr.bf16.mxu1 %v416_v0 }
 0x109   :  { %393 = vmatpush3.bf16.msra.mxu1 %v415_v25 }
 0x1cf   :  { %v218_v27 = vpop.f32.mrb[0].mxu1 }
 0x1d0   :  { %v219_v28 = vadd.f32 %v323_v26, %v218_v27  ;;  %v384_v29 = vpop.f32.mrb[1].mxu1 }
 0x1d1   :  { %v221_v30 = vpop.f32.mrb[2].mxu1 }
 0x1d2   :  { %v224_v31 = vmax.f32 %v219_v28, 0.0  ;;  %v385_v32 = vpop.f32.mrb[3].mxu1 }
 0x1d4   :  { %v225_v33 = vpack.c.bf16 %v224_v31, %v224_v31 }
 0x1d6   :  { %395 = vmatmul.mubr.msk.bf16.vlgmr.msra.gmra.mrb[4].mxu1 %vm180_vm1, %v225_v33 }
 0x2a9   :  { %v302_v35 = vpop.f32.mrb[4].mxu1 }
 0x2aa   :  { %v303_v36 = vadd.f32 %v329_v34, %v302_v35  ;;  %v396_v37 = vpop.f32.mrb[5].mxu1 }
 0x2ab   :  { %v305_v38 = vpop.f32.mrb[6].mxu1 }
 0x2ac   :  { %309 = vst.msk [vmem:[%s552_s7] sm:$0x3] %vm308_vm2, %v303_v36  ;;  %v397_v39 = vpop.f32.mrb[7].mxu1 }

// kernel: visual_q_pair_forward.6
= control target key start
LH: loop header
LB: loop body
LE: loop exit
PB: predicated region body
PF: predicated region fallthrough
CT: control target
= control target key end

     0   :  { %v1782_v0 = vmov 0.0   ;;  %vm1783_vm0 = vmmov 0   ;;  %vm69_vm1 = vcmask 1041409   ;;  %vm1204_vm2 = vcmask 1040384   ;;  %s2201_s1 = inlined_call_operand.vmem [shape: bf16[9,128,128], index: 1, kind: input, shape index: {}]   ;;  %s2202_s0 = inlined_call_operand.vmem [shape: bf16[2,3,3,128], index: 0, kind: input, shape index: {}]   ;;  %s2203_s2 = inlined_call_operand.vmem [shape: f32[1,128], index: 2, kind: input, shape index: {}]   ;;  %s2204_s3 = inlined_call_operand.vmem [shape: bf16[2,1,1,128], index: 3, kind: output, shape index: {}]  }
   0x1   :  { %1527 = vmatprep.subr.bf16.mxu0 %v1782_v0  ;;  %v1710_v1 = vld [vmem:[%s2201_s1 + $0x40] sm:$0xff]   ;;  %1547 = vmatprep.subr.bf16.mxu1 %v1782_v0  ;;  %v1712_v3 = vld [vmem:[%s2201_s1 + $0x48] sm:$0xff]   ;;  %v1714_v5 = vld [vmem:[%s2201_s1 + $0x50] sm:$0xff]   ;;  %vm1205_vm3 = vsmask.f32 256 }
   0x2   :  { %v1711_v2 = vld [vmem:[%s2201_s1] sm:$0xff]   ;;  %1543 = vmatprep.mubr.msk.bf16.mxu0 %vm1783_vm0, %v1782_v0  ;;  %1563 = vmatprep.mubr.msk.bf16.mxu1 %vm1783_vm0, %v1782_v0  ;;  %v1713_v4 = vld [vmem:[%s2201_s1 + $0x8] sm:$0xff]   ;;  %v1715_v6 = vld [vmem:[%s2201_s1 + $0x10] sm:$0xff]  }
   0x3   :  { %1528 = vmatpush3.bf16.msra.mxu0 %v1710_v1  ;;  %1548 = vmatpush3.bf16.msra.mxu1 %v1711_v2  ;;  %v1716_v7 = vld [vmem:[%s2201_s1 + $0x58] sm:$0xff]   ;;  %v1718_v9 = vld [vmem:[%s2201_s1 + $0x60] sm:$0xff]   ;;  %v1720_v13 = vld [vmem:[%s2201_s1 + $0x68] sm:$0xff]  }
   0x4   :  { %1529 = vmatprep.subr.bf16.mxu0 %v1782_v0  ;;  %1549 = vmatprep.subr.bf16.mxu1 %v1782_v0  ;;  %v1717_v8 = vld [vmem:[%s2201_s1 + $0x18] sm:$0xff]   ;;  %v1719_v10 = vld [vmem:[%s2201_s1 + $0x20] sm:$0xff]   ;;  %v1721_v15 = vld [vmem:[%s2201_s1 + $0x28] sm:$0xff]  }
   0x5   :  { %v1233_v11 = vld.sshfl [vmem:[%s2202_s0] sm:$0x1 pattern:$0x76325410]  ;;  %v1722_v17 = vld [vmem:[%s2201_s1 + $0x70] sm:$0xff]   ;;  %v1724_v21 = vld [vmem:[%s2201_s1 + $0x78] sm:$0xff]  }
   0x6   :  { %v1234_v12 = vld.sshfl [vmem:[%s2202_s0 + $0x6] sm:$0x1 pattern:$0x76325410]  ;;  %v66_v14 = vunpack.c.l.b16 %v1233_v11  ;;  %v1723_v19 = vld [vmem:[%s2201_s1 + $0x30] sm:$0xff]   ;;  %v1725_v23 = vld [vmem:[%s2201_s1 + $0x38] sm:$0xff]  }
   0x7   :  { %1530 = vmatpush3.bf16.msra.mxu0 %v1712_v3  ;;  %1550 = vmatpush3.bf16.msra.mxu1 %v1713_v4  ;;  %v67_v16 = vunpack.c.l.b16 %v1234_v12  ;;  %v1726_v27 = vld [vmem:[%s2201_s1 + $0x80] sm:$0xff]   ;;  %v1728_v29 = vld [vmem:[%s2201_s1 + $0x88] sm:$0xff]   ;;  %v1730_v31 = vld [vmem:[%s2201_s1 + $0x90] sm:$0xff]  }
   0x8   :  { %1531 = vmatprep.subr.bf16.mxu0 %v1782_v0  ;;  %1551 = vmatprep.subr.bf16.mxu1 %v1782_v0  ;;  %v68_v18 = vrot.slane %v66_v14, 1  ;;  %v1727_v28 = vld [vmem:[%s2201_s1 + $0xc0] sm:$0xff]   ;;  %v1729_v30 = vld [vmem:[%s2201_s1 + $0xc8] sm:$0xff]   ;;  %v1731_v32 = vld [vmem:[%s2201_s1 + $0xd0] sm:$0xff]  }
   0x9   :  { %v161_v20 = vrot.slane %v67_v16, 7  ;;  %v1732_v33 = vld [vmem:[%s2201_s1 + $0x98] sm:$0xff]   ;;  %v1267_v35 = vld.sshfl [vmem:[%s2202_s0] sm:$0x2 pattern:$0x76325410]  ;;  %vm1206_vm4 = vmand %vm1204_vm2, %vm1205_vm3 }
   0xa   :  { %v70_v22 = vsel %vm69_vm1, %v67_v16, %v68_v18  ;;  %v1733_v34 = vld [vmem:[%s2201_s1 + $0xd8] sm:$0xff]   ;;  %v1268_v36 = vld.sshfl [vmem:[%s2202_s0 + $0x6] sm:$0x2 pattern:$0x76325410]  ;;  %v288_v40 = vunpack.c.l.b16 %v1267_v35  ;;  %v1736_v41 = vld [vmem:[%s2201_s1 + $0xa8] sm:$0xff]  }
   0xb   :  { %1532 = vmatpush3.bf16.msra.mxu0 %v1714_v5  ;;  %1552 = vmatpush3.bf16.msra.mxu1 %v1715_v6  ;;  %v162_v24 = vsel %vm69_vm1, %v161_v20, %v66_v14  ;;  %v71_v25 = vpack.c.b16 %v70_v22, %v70_v22  ;;  %v1926_v37 = vld.sshfl [vmem:[%s2202_s0 + $0x8] sm:$0x1 pattern:$0x76325410]  ;;  %v1734_v38 = vld [vmem:[%s2201_s1 + $0xa0] sm:$0xff]   ;;  %v289_v42 = vunpack.c.l.b16 %v1268_v36  ;;  %v1738_v46 = vld [vmem:[%s2201_s1 + $0xb0] sm:$0xff]  }
   0xc   :  { %1533 = vmatprep.subr.bf16.mxu0 %v1782_v0  ;;  %1553 = vmatprep.subr.bf16.mxu1 %v1782_v0  ;;  %v163_v26 = vpack.c.b16 %v162_v24, %v162_v24  ;;  %v1735_v39 = vld [vmem:[%s2201_s1 + $0xe0] sm:$0xff]   ;;  %v421_v44 = vunpack.c.l.b16 %v1926_v37  ;;  %v1737_v45 = vld [vmem:[%s2201_s1 + $0xe8] sm:$0xff]   ;;  %v290_v47 = vrot.slane %v288_v40, 2  ;;  %v1739_v48 = vld [vmem:[%s2201_s1 + $0xf0] sm:$0xff]  }
   0xd   :  { %v1942_v43 = vld.sshfl [vmem:[%s2202_s0 + $0x2] sm:$0x1 pattern:$0x76325410]  ;;  %v291_v50 = vrot.slane %v289_v42, 1  ;;  %v1740_v58 = vld [vmem:[%s2201_s1 + $0xb8] sm:$0xff]  }
   0xe   :  { %v1351_v49 = vld.sshfl [vmem:[%s2202_s0 + $0x2] sm:$0x2 pattern:$0x76325410]  ;;  %v422_v51 = vrot.slane %v421_v44, 7  ;;  %v420_v54 = vunpack.c.l.b16 %v1942_v43  ;;  %v1741_v60 = vld [vmem:[%s2201_s1 + $0xf8] sm:$0xff]  }
   0xf   :  { %1534 = vmatpush3.bf16.msra.mxu0 %v1716_v7  ;;  %1554 = vmatpush3.bf16.msra.mxu1 %v1717_v8  ;;  %v1352_v52 = vld.sshfl [vmem:[%s2202_s0 + $0x8] sm:$0x2 pattern:$0x76325410]  ;;  %v680_v53 = vunpack.c.l.b16 %v1351_v49  ;;  %v292_v59 = vsel %vm69_vm1, %v291_v50, %v290_v47  ;;  %v1742_v1 = vld [vmem:[%s2201_s1 + $0x100] sm:$0xff]   ;;  %v1746_v7 = vld [vmem:[%s2201_s1 + $0x110] sm:$0xff]  }
  0x10   :  { %1535 = vmatprep.subr.bf16.mxu0 %v1782_v0  ;;  %1555 = vmatprep.subr.bf16.mxu1 %v1782_v0  ;;  %v681_v55 = vunpack.c.l.b16 %v1352_v52  ;;  %v423_v61 = vsel %vm69_vm1, %v422_v51, %v420_v54  ;;  %v293_v63 = vpack.c.b16 %v292_v59, %v292_v59  ;;  %v1743_v3 = vld [vmem:[%s2201_s1 + $0x140] sm:$0xff]   ;;  %v1744_v4 = vld [vmem:[%s2201_s1 + $0x108] sm:$0xff]   ;;  %v1747_v8 = vld [vmem:[%s2201_s1 + $0x150] sm:$0xff]  }
  0x11   :  { %v682_v56 = vrot.slane %v680_v53, 2  ;;  %v424_v2 = vpack.c.b16 %v423_v61, %v423_v61  ;;  %v1745_v5 = vld [vmem:[%s2201_s1 + $0x148] sm:$0xff]   ;;  %v1379_v6 = vld.sshfl [vmem:[%s2202_s0 + $0x4] sm:$0x1 pattern:$0x76325410] }
  0x12   :  { %v683_v57 = vrot.slane %v681_v55, 1  ;;  %v1748_v14 = vld [vmem:[%s2201_s1 + $0x118] sm:$0xff]   ;;  %v1750_v18 = vld [vmem:[%s2201_s1 + $0x120] sm:$0xff]   ;;  %v1761_v40 = vld [vmem:[%s2201_s1 + $0x1c8] sm:$0xff]  }
  0x13   :  { %1536 = vmatpush3.bf16.msra.mxu0 %v1718_v9  ;;  %1556 = vmatpush3.bf16.msra.mxu1 %v1719_v10  ;;  %v1380_v9 = vld.sshfl [vmem:[%s2202_s0 + $0xa] sm:$0x1 pattern:$0x76325410]  ;;  %v812_v10 = vunpack.c.l.b16 %v1379_v6  ;;  %v1749_v16 = vld [vmem:[%s2201_s1 + $0x158] sm:$0xff]   ;;  %v1751_v20 = vld [vmem:[%s2201_s1 + $0x160] sm:$0xff]  }
  0x14   :  { %1537 = vmatprep.subr.bf16.mxu0 %v1782_v0  ;;  %1557 = vmatprep.subr.bf16.mxu1 %v1782_v0  ;;  %v1979_v62 = vsel %vm69_vm1, %v683_v57, %v682_v56  ;;  %v813_v11 = vunpack.c.l.b16 %v1380_v9  ;;  %v1758_v36 = vld [vmem:[%s2201_s1 + $0x180] sm:$0xff]   ;;  %v1763_v42 = vld [vmem:[%s2201_s1 + $0x1d0] sm:$0xff]   ;;  %v1764_v43 = vld [vmem:[%s2201_s1 + $0x198] sm:$0xff]  }
  0x15   :  { %v944_v12 = vrot.slane %v812_v10, 1  ;;  %v685_v37 = vpack.c.b16 %v1979_v62, %v1979_v62  ;;  %v1768_v47 = vld [vmem:[%s2201_s1 + $0x1a8] sm:$0xff]   ;;  %v1770_v49 = vld [vmem:[%s2201_s1 + $0x1b0] sm:$0xff]   ;;  %v1772_v51 = vld [vmem:[%s2201_s1 + $0x1b8] sm:$0xff]  }
  0x16   :  { %v1771_v50 = vld [vmem:[%s2201_s1 + $0x1f0] sm:$0xff]   ;;  %v1773_v52 = vld [vmem:[%s2201_s1 + $0x1f8] sm:$0xff]   ;;  %v1775_v56 = vld [vmem:[%s2201_s1 + $0x208] sm:$0xff]  }
  0x17   :  { %1538 = vmatpush3.bf16.msra.mxu0 %v1720_v13  ;;  %1558 = vmatpush3.bf16.msra.mxu1 %v1721_v15  ;;  %v814_v13 = vrot.slane %v813_v11, 7  ;;  %v2020_v15 = vsel %vm69_vm1, %v813_v11, %v944_v12  ;;  %v1776_v57 = vld [vmem:[%s2201_s1 + $0x210] sm:$0xff]   ;;  %v1778_v59 = vld [vmem:[%s2201_s1 + $0x220] sm:$0xff]   ;;  %v1781_v62 = vld [vmem:[%s2201_s1 + $0x238] sm:$0xff]  }
  0x18   :  { %1539 = vmatprep.subr.bf16.mxu0 %v1782_v0  ;;  %1559 = vmatprep.subr.bf16.mxu1 %v1782_v0  ;;  %v946_v55 = vpack.c.b16 %v2020_v15, %v2020_v15  ;;  %v1780_v61 = vld [vmem:[%s2201_s1 + $0x230] sm:$0xff]  }
  0x1b   :  { %1540 = vmatpush3.bf16.msra.mxu0 %v1722_v17  ;;  %1560 = vmatpush3.bf16.msra.mxu1 %v1723_v19  ;;  %v2027_v17 = vsel %vm69_vm1, %v814_v13, %v812_v10  ;;  %v1435_v19 = vld.sshfl [vmem:[%s2202_s0 + $0x4] sm:$0x2 pattern:$0x76325410] }
  0x1c   :  { %1541 = vmatprep.subr.bf16.mxu0 %v1782_v0  ;;  %1561 = vmatprep.subr.bf16.mxu1 %v1782_v0  ;;  %v1072_v22 = vunpack.c.l.b16 %v1435_v19  ;;  %v816_v53 = vpack.c.b16 %v2027_v17, %v2027_v17 }
  0x1e   :  { %v1074_v24 = vrot.slane %v1072_v22, 2 }
  0x1f   :  { %1542 = vmatpush3.bf16.msra.mxu0 %v1724_v21  ;;  %1562 = vmatpush3.bf16.msra.mxu1 %v1725_v23  ;;  %v1436_v21 = vld.sshfl [vmem:[%s2202_s0 + $0xa] sm:$0x2 pattern:$0x76325410] }
  0x20   :  { %1567 = vmatprep.subr.bf16.mxu0 %v1782_v0  ;;  %1587 = vmatprep.subr.bf16.mxu1 %v1782_v0  ;;  %v1073_v23 = vunpack.c.l.b16 %v1436_v21 }
  0x22   :  { %1544 = vmatmul.mubr.bf16.vlgmr.msra.gmra.mrb[0].mxu0 %v71_v25  ;;  %1564 = vmatmul.mubr.bf16.vlgmr.msra.gmra.mrb[0].mxu1 %v163_v26  ;;  %v1752_v25 = vld [vmem:[%s2201_s1 + $0x128] sm:$0xff]   ;;  %v1075_v26 = vrot.slane %v1073_v23, 1 }
  0x23   :  { %1568 = vmatpush3.bf16.msra.mxu0 %v1726_v27  ;;  %1588 = vmatpush3.bf16.msra.mxu1 %v1727_v28  ;;  %v1753_v27 = vld [vmem:[%s2201_s1 + $0x168] sm:$0xff]  }
  0x24   :  { %1569 = vmatprep.subr.bf16.mxu0 %v1782_v0  ;;  %1589 = vmatprep.subr.bf16.mxu1 %v1782_v0  ;;  %v2053_v28 = vsel %vm69_vm1, %v1075_v26, %v1074_v24 }
  0x25   :  { %1583 = vmatprep.mubr.msk.bf16.mxu0 %vm1783_vm0, %v1782_v0  ;;  %1603 = vmatprep.mubr.msk.bf16.mxu1 %vm1783_vm0, %v1782_v0 }
  0x27   :  { %1570 = vmatpush3.bf16.msra.mxu0 %v1728_v29  ;;  %1590 = vmatpush3.bf16.msra.mxu1 %v1729_v30  ;;  %v1754_v29 = vld [vmem:[%s2201_s1 + $0x130] sm:$0xff]   ;;  %v552_v30 = vrot.slane %v420_v54, 1  ;;  %v1774_v54 = vld [vmem:[%s2201_s1 + $0x200] sm:$0xff]  }
  0x28   :  { %1571 = vmatprep.subr.bf16.mxu0 %v1782_v0  ;;  %1591 = vmatprep.subr.bf16.mxu1 %v1782_v0 }
  0x2b   :  { %1572 = vmatpush3.bf16.msra.mxu0 %v1730_v31  ;;  %1592 = vmatpush3.bf16.msra.mxu1 %v1731_v32  ;;  %v1755_v31 = vld [vmem:[%s2201_s1 + $0x170] sm:$0xff]   ;;  %v1756_v32 = vld [vmem:[%s2201_s1 + $0x138] sm:$0xff]  }
  0x2c   :  { %1573 = vmatprep.subr.bf16.mxu0 %v1782_v0  ;;  %1593 = vmatprep.subr.bf16.mxu1 %v1782_v0 }
  0x2f   :  { %1574 = vmatpush3.bf16.msra.mxu0 %v1732_v33  ;;  %1594 = vmatpush3.bf16.msra.mxu1 %v1733_v34  ;;  %v553_v33 = vsel %vm69_vm1, %v421_v44, %v552_v30  ;;  %v1757_v34 = vld [vmem:[%s2201_s1 + $0x178] sm:$0xff]  }
  0x30   :  { %1575 = vmatprep.subr.bf16.mxu0 %v1782_v0  ;;  %1595 = vmatprep.subr.bf16.mxu1 %v1782_v0  ;;  %v554_v35 = vpack.c.b16 %v553_v33, %v553_v33  ;;  %v1765_v44 = vld [vmem:[%s2201_s1 + $0x1d8] sm:$0xff]  }
  0x33   :  { %1576 = vmatpush3.bf16.msra.mxu0 %v1734_v38  ;;  %1596 = vmatpush3.bf16.msra.mxu1 %v1735_v39  ;;  %v1759_v38 = vld [vmem:[%s2201_s1 + $0x1c0] sm:$0xff]   ;;  %v1760_v39 = vld [vmem:[%s2201_s1 + $0x188] sm:$0xff]  }
  0x34   :  { %1577 = vmatprep.subr.bf16.mxu0 %v1782_v0  ;;  %1597 = vmatprep.subr.bf16.mxu1 %v1782_v0 }
  0x37   :  { %1578 = vmatpush3.bf16.msra.mxu0 %v1736_v41  ;;  %1598 = vmatpush3.bf16.msra.mxu1 %v1737_v45  ;;  %v1762_v41 = vld [vmem:[%s2201_s1 + $0x190] sm:$0xff]   ;;  %v1766_v45 = vld [vmem:[%s2201_s1 + $0x1a0] sm:$0xff]  }
  0x38   :  { %1579 = vmatprep.subr.bf16.mxu0 %v1782_v0  ;;  %1599 = vmatprep.subr.bf16.mxu1 %v1782_v0 }
  0x3b   :  { %1580 = vmatpush3.bf16.msra.mxu0 %v1738_v46  ;;  %1600 = vmatpush3.bf16.msra.mxu1 %v1739_v48  ;;  %v1767_v46 = vld [vmem:[%s2201_s1 + $0x1e0] sm:$0xff]   ;;  %v1769_v48 = vld [vmem:[%s2201_s1 + $0x1e8] sm:$0xff]  }
  0x3c   :  { %1581 = vmatprep.subr.bf16.mxu0 %v1782_v0  ;;  %1601 = vmatprep.subr.bf16.mxu1 %v1782_v0 }
  0x3f   :  { %1582 = vmatpush3.bf16.msra.mxu0 %v1740_v58  ;;  %1602 = vmatpush3.bf16.msra.mxu1 %v1741_v60  ;;  %v1777_v58 = vld [vmem:[%s2201_s1 + $0x218] sm:$0xff]   ;;  %v1779_v60 = vld [vmem:[%s2201_s1 + $0x228] sm:$0xff]  }
  0x40   :  { %1607 = vmatprep.subr.bf16.mxu0 %v1782_v0  ;;  %1627 = vmatprep.subr.bf16.mxu1 %v1782_v0 }
  0x42   :  { %1584 = vmatmul.mubr.bf16.vlgmr.msra.gmra.mrb[4].mxu0 %v293_v63  ;;  %1604 = vmatmul.mubr.bf16.vlgmr.msra.gmra.mrb[4].mxu1 %v424_v2  ;;  %v1077_v63 = vpack.c.b16 %v2053_v28, %v2053_v28 }
  0x43   :  { %1608 = vmatpush3.bf16.msra.mxu0 %v1742_v1  ;;  %1628 = vmatpush3.bf16.msra.mxu1 %v1743_v3 }
  0x44   :  { %1609 = vmatprep.subr.bf16.mxu0 %v1782_v0  ;;  %1629 = vmatprep.subr.bf16.mxu1 %v1782_v0 }
  0x45   :  { %1623 = vmatprep.mubr.msk.bf16.mxu0 %vm1783_vm0, %v1782_v0  ;;  %1643 = vmatprep.mubr.msk.bf16.mxu1 %vm1783_vm0, %v1782_v0 }
  0x47   :  { %1610 = vmatpush3.bf16.msra.mxu0 %v1744_v4  ;;  %1630 = vmatpush3.bf16.msra.mxu1 %v1745_v5 }
  0x48   :  { %1611 = vmatprep.subr.bf16.mxu0 %v1782_v0  ;;  %1631 = vmatprep.subr.bf16.mxu1 %v1782_v0 }
  0x4b   :  { %1612 = vmatpush3.bf16.msra.mxu0 %v1746_v7  ;;  %1632 = vmatpush3.bf16.msra.mxu1 %v1747_v8 }
  0x4c   :  { %1613 = vmatprep.subr.bf16.mxu0 %v1782_v0  ;;  %1633 = vmatprep.subr.bf16.mxu1 %v1782_v0 }
  0x4f   :  { %1614 = vmatpush3.bf16.msra.mxu0 %v1748_v14  ;;  %1634 = vmatpush3.bf16.msra.mxu1 %v1749_v16 }
  0x50   :  { %1615 = vmatprep.subr.bf16.mxu0 %v1782_v0  ;;  %1635 = vmatprep.subr.bf16.mxu1 %v1782_v0 }
  0x53   :  { %1616 = vmatpush3.bf16.msra.mxu0 %v1750_v18  ;;  %1636 = vmatpush3.bf16.msra.mxu1 %v1751_v20 }
  0x54   :  { %1617 = vmatprep.subr.bf16.mxu0 %v1782_v0  ;;  %1637 = vmatprep.subr.bf16.mxu1 %v1782_v0 }
  0x57   :  { %1618 = vmatpush3.bf16.msra.mxu0 %v1752_v25  ;;  %1638 = vmatpush3.bf16.msra.mxu1 %v1753_v27 }
  0x58   :  { %1619 = vmatprep.subr.bf16.mxu0 %v1782_v0  ;;  %1639 = vmatprep.subr.bf16.mxu1 %v1782_v0 }
  0x5b   :  { %1620 = vmatpush3.bf16.msra.mxu0 %v1754_v29  ;;  %1640 = vmatpush3.bf16.msra.mxu1 %v1755_v31 }
  0x5c   :  { %1621 = vmatprep.subr.bf16.mxu0 %v1782_v0  ;;  %1641 = vmatprep.subr.bf16.mxu1 %v1782_v0 }
  0x5f   :  { %1622 = vmatpush3.bf16.msra.mxu0 %v1756_v32  ;;  %1642 = vmatpush3.bf16.msra.mxu1 %v1757_v34 }
  0x60   :  { %1647 = vmatprep.subr.bf16.mxu0 %v1782_v0  ;;  %1667 = vmatprep.subr.bf16.mxu1 %v1782_v0 }
  0x62   :  { %1624 = vmatmul.mubr.bf16.vlgmr.msra.gmra.mrb[8].mxu0 %v554_v35  ;;  %1644 = vmatmul.mubr.bf16.vlgmr.msra.gmra.mrb[8].mxu1 %v685_v37 }
  0x63   :  { %1648 = vmatpush3.bf16.msra.mxu0 %v1758_v36  ;;  %1668 = vmatpush3.bf16.msra.mxu1 %v1759_v38 }
  0x64   :  { %1649 = vmatprep.subr.bf16.mxu0 %v1782_v0  ;;  %1669 = vmatprep.subr.bf16.mxu1 %v1782_v0 }
  0x65   :  { %1663 = vmatprep.mubr.msk.bf16.mxu0 %vm1783_vm0, %v1782_v0  ;;  %1683 = vmatprep.mubr.msk.bf16.mxu1 %vm1783_vm0, %v1782_v0 }
  0x67   :  { %1650 = vmatpush3.bf16.msra.mxu0 %v1760_v39  ;;  %1670 = vmatpush3.bf16.msra.mxu1 %v1761_v40  ;;  %v1784_v39 = vmov 1966171168  }
  0x68   :  { %1651 = vmatprep.subr.bf16.mxu0 %v1782_v0  ;;  %1671 = vmatprep.subr.bf16.mxu1 %v1782_v0  ;;  %v1179_v40 = vunpack.c.l.s4 %v1784_v39 }
  0x6b   :  { %1652 = vmatpush3.bf16.msra.mxu0 %v1762_v41  ;;  %1672 = vmatpush3.bf16.msra.mxu1 %v1763_v42  ;;  %v1181_v41 = vlaneseq  ;;  %v1180_v42 = vunpack.c.0.s8 %v1179_v40 }
  0x6c   :  { %1653 = vmatprep.subr.bf16.mxu0 %v1782_v0  ;;  %1673 = vmatprep.subr.bf16.mxu1 %v1782_v0 }
  0x6f   :  { %1654 = vmatpush3.bf16.msra.mxu0 %v1764_v43  ;;  %1674 = vmatpush3.bf16.msra.mxu1 %v1765_v44  ;;  %v1182_v43 = vshrl.u32 %v1181_v41, 7 }
  0x70   :  { %1655 = vmatprep.subr.bf16.mxu0 %v1782_v0  ;;  %1675 = vmatprep.subr.bf16.mxu1 %v1782_v0 }
  0x73   :  { %1656 = vmatpush3.bf16.msra.mxu0 %v1766_v45  ;;  %1676 = vmatpush3.bf16.msra.mxu1 %v1767_v46  ;;  %v1445_v45 = vld [vmem:[%s2203_s2] ss:$0 sm:$0xff] }
  0x74   :  { %1657 = vmatprep.subr.bf16.mxu0 %v1782_v0  ;;  %1677 = vmatprep.subr.bf16.mxu1 %v1782_v0 }
  0x77   :  { %1658 = vmatpush3.bf16.msra.mxu0 %v1768_v47  ;;  %1678 = vmatpush3.bf16.msra.mxu1 %v1769_v48 }
  0x78   :  { %1659 = vmatprep.subr.bf16.mxu0 %v1782_v0  ;;  %1679 = vmatprep.subr.bf16.mxu1 %v1782_v0 }
  0x7b   :  { %1660 = vmatpush3.bf16.msra.mxu0 %v1770_v49  ;;  %1680 = vmatpush3.bf16.msra.mxu1 %v1771_v50  ;;  %v1183_v50 = vsub.s32 %v1180_v42, %v1182_v43 }
  0x7c   :  { %1661 = vmatprep.subr.bf16.mxu0 %v1782_v0  ;;  %1681 = vmatprep.subr.bf16.mxu1 %v1782_v0 }
  0x7f   :  { %1662 = vmatpush3.bf16.msra.mxu0 %v1772_v51  ;;  %1682 = vmatpush3.bf16.msra.mxu1 %v1773_v52 }
  0x80   :  { %1687 = vmatprep.subr.bf16.mxu0 %v1782_v0 }
  0x82   :  { %1664 = vmatmul.mubr.bf16.vlgmr.msra.gmra.mrb[12].mxu0 %v816_v53  ;;  %1684 = vmatmul.mubr.bf16.vlgmr.msra.gmra.mrb[12].mxu1 %v946_v55 }
  0x83   :  { %1688 = vmatpush3.bf16.msra.mxu0 %v1774_v54  ;;  %1703 = vmatprep.mubr.msk.bf16.mxu0 %vm1783_vm0, %v1782_v0 }
  0x84   :  { %1689 = vmatprep.subr.bf16.mxu0 %v1782_v0 }
  0x87   :  { %1690 = vmatpush3.bf16.msra.mxu0 %v1775_v56  ;;  %v1207_v56 = vld [vmem:[%s2204_s3] sm:$0x1] }
  0x88   :  { %1691 = vmatprep.subr.bf16.mxu0 %v1782_v0 }
  0x8b   :  { %1692 = vmatpush3.bf16.msra.mxu0 %v1776_v57 }
  0x8c   :  { %1693 = vmatprep.subr.bf16.mxu0 %v1782_v0 }
  0x8f   :  { %1694 = vmatpush3.bf16.msra.mxu0 %v1777_v58 }
  0x90   :  { %1695 = vmatprep.subr.bf16.mxu0 %v1782_v0 }
  0x93   :  { %1696 = vmatpush3.bf16.msra.mxu0 %v1778_v59  ;;  %v1210_v59 = vld [vmem:[%s2204_s3 + $0x1] sm:$0x1] }
  0x94   :  { %1697 = vmatprep.subr.bf16.mxu0 %v1782_v0 }
  0x97   :  { %1698 = vmatpush3.bf16.msra.mxu0 %v1779_v60 }
  0x98   :  { %1699 = vmatprep.subr.bf16.mxu0 %v1782_v0 }
  0x9b   :  { %1700 = vmatpush3.bf16.msra.mxu0 %v1780_v61 }
  0x9c   :  { %1701 = vmatprep.subr.bf16.mxu0 %v1782_v0 }
  0x9f   :  { %1702 = vmatpush3.bf16.msra.mxu0 %v1781_v62 }
  0xa2   :  { %1704 = vmatmul.mubr.bf16.vlgmr.msra.gmra.mrb[16].mxu0 %v1077_v63 }
  0xf5   :  { %v155_v1 = vpop.f32.mrb[0].mxu0  ;;  %v247_v3 = vpop.f32.mrb[0].mxu1 }
  0xf6   :  { %v1545_v2 = vpop.f32.mrb[1].mxu0  ;;  %v248_v4 = vadd.f32 %v247_v3, %v155_v1  ;;  %v1565_v6 = vpop.f32.mrb[1].mxu1 }
  0xf7   :  { %v158_v5 = vpop.f32.mrb[2].mxu0  ;;  %v250_v8 = vpop.f32.mrb[2].mxu1 }
  0xf8   :  { %v1546_v7 = vpop.f32.mrb[3].mxu0  ;;  %v1566_v9 = vpop.f32.mrb[3].mxu1 }
 0x115   :  { %v377_v10 = vpop.f32.mrb[4].mxu0  ;;  %v508_v13 = vpop.f32.mrb[4].mxu1 }
 0x116   :  { %v383_v11 = vadd.f32 %v377_v10, %v248_v4  ;;  %v1585_v12 = vpop.f32.mrb[5].mxu0  ;;  %v1605_v0 = vpop.f32.mrb[5].mxu1 }
 0x117   :  { %v380_v14 = vpop.f32.mrb[6].mxu0  ;;  %v511_v17 = vpop.f32.mrb[6].mxu1 }
 0x118   :  { %v514_v15 = vadd.f32 %v508_v13, %v383_v11  ;;  %v1586_v16 = vpop.f32.mrb[7].mxu0  ;;  %v1606_v18 = vpop.f32.mrb[7].mxu1 }
 0x135   :  { %v638_v19 = vpop.f32.mrb[8].mxu0  ;;  %v769_v22 = vpop.f32.mrb[8].mxu1 }
 0x136   :  { %v644_v20 = vadd.f32 %v638_v19, %v514_v15  ;;  %v1625_v21 = vpop.f32.mrb[9].mxu0  ;;  %v1645_v24 = vpop.f32.mrb[9].mxu1 }
 0x137   :  { %v641_v23 = vpop.f32.mrb[10].mxu0  ;;  %v772_v27 = vpop.f32.mrb[10].mxu1 }
 0x138   :  { %v775_v25 = vadd.f32 %v769_v22, %v644_v20  ;;  %v1626_v26 = vpop.f32.mrb[11].mxu0  ;;  %v1646_v28 = vpop.f32.mrb[11].mxu1 }
 0x155   :  { %v900_v29 = vpop.f32.mrb[12].mxu0  ;;  %v1030_v32 = vpop.f32.mrb[12].mxu1 }
 0x156   :  { %v906_v30 = vadd.f32 %v900_v29, %v775_v25  ;;  %v1665_v31 = vpop.f32.mrb[13].mxu0  ;;  %v1685_v34 = vpop.f32.mrb[13].mxu1 }
 0x157   :  { %v903_v33 = vpop.f32.mrb[14].mxu0  ;;  %v1033_v37 = vpop.f32.mrb[14].mxu1 }
 0x158   :  { %v1036_v35 = vadd.f32 %v1030_v32, %v906_v30  ;;  %v1666_v36 = vpop.f32.mrb[15].mxu0  ;;  %v1686_v38 = vpop.f32.mrb[15].mxu1 }
 0x175   :  { %v1161_v44 = vpop.f32.mrb[16].mxu0 }
 0x176   :  { %v1167_v46 = vadd.f32 %v1161_v44, %v1036_v35  ;;  %v1705_v47 = vpop.f32.mrb[17].mxu0 }
 0x177   :  { %v1164_v48 = vpop.f32.mrb[18].mxu0 }
 0x178   :  { %v1175_v49 = vadd.f32 %v1445_v45, %v1167_v46  ;;  %v1706_v51 = vpop.f32.mrb[19].mxu0 }
 0x17a   :  { %v1176_v52 = vmax.f32 %v1175_v49, 0.0 }
 0x17c   :  { %v1184_v53 = vrot.slane %v1176_v52, %v1183_v50 }
 0x17e   :  { %v1185_v54 = vcombine.high %v1184_v53, %v1184_v53  ;;  %v1192_v55 = vrot.slane %v1184_v53, %v1183_v50 }
 0x180   :  { %v1199_v57 = vrot.slane %v1185_v54, %v1183_v50  ;;  %v1202_v58 = vpack.c.bf16 %v1192_v55, %v1192_v55 }
 0x182   :  { %v1203_v60 = vpack.c.bf16 %v1199_v57, %v1199_v57  ;;  %v1208_v61 = vsel %vm1206_vm4, %v1202_v58, %v1207_v56 }
 0x183   :  { %1209 = vst [vmem:[%s2204_s3] sm:$0x1] %v1208_v61 }
 0x184   :  { %v1211_v62 = vsel %vm1206_vm4, %v1203_v60, %v1210_v59 }
 0x185   :  { %1212 = vst [vmem:[%s2204_s3 + $0x1] sm:$0x1] %v1211_v62 }

</bundles_post_ra>
